<compile_context>
chip_gen: v7x
topology: tpu7x:2x2x1
jax: 0.10.0
libtpu: 0.0.40
codegen_flags: <defaults>
</compile_context>

<pallas_src>
import functools

import jax
import jax.numpy as jnp
from jax.experimental import pallas as pl
from jax.experimental.pallas import tpu as pltpu

IN_DIM = 512      # Encoder output dim (resnet34 fc.in_features)
HID = 128
N_CLASSES = 4
K_SAMPLE = 8


# ---------------------------------------------------------------------------
# Kernel: tiled, split bag-level forward with online softmax over instances.
# grid = (num_splits, tiles_per_split); split axis is "parallel" (v7x 2x TC),
# tile axis is the "arbitrary" reduction axis.  Per-split (m, l, acc) partials
# are accumulated directly in resident output blocks and merged in the wrapper.
# ---------------------------------------------------------------------------
def clam_mb_main_kernel(feat_ref, wcat_ref, bcat_ref, wa2t_ref, ba2_ref,
                        scores_ref, m_ref, l_ref, acc_ref,
                        *, n, tile_n, tiles_per_split):
    s = pl.program_id(0)
    t = pl.program_id(1)

    @pl.when(t == 0)
    def _init():
        # finite init (not -inf) so a fully-padded tile/split stays NaN-free
        m_ref[...] = jnp.full_like(m_ref, -1e30)
        l_ref[...] = jnp.zeros_like(l_ref)
        acc_ref[...] = jnp.zeros_like(acc_ref)

    # validity mask for this tile (global, unclamped row offset)
    row0 = (s * tiles_per_split + t) * tile_n
    lane = jax.lax.broadcasted_iota(jnp.int32, (1, tile_n), 1)
    valid = (row0 + lane) < n                                        # (1, T)

    # fused 256-wide MXU pass: feat @ [Wfc | Wfc@Wa1] = [h | pre-tanh hidden]
    feat = feat_ref[...].astype(jnp.bfloat16)                        # (T, 512)
    ha = jnp.dot(feat, wcat_ref[...],
                 preferred_element_type=jnp.float32) + bcat_ref[...]  # (T, 256)
    h = jnp.where(valid.T, ha[:, :HID], 0.0)                         # (T, 128) f32
    a_hid = jnp.tanh(ha[:, HID:]).astype(jnp.bfloat16)               # (T, 128)

    # attention scores, lane-dense (C, T)
    scores = jax.lax.dot_general(
        wa2t_ref[...], a_hid, (((1,), (1,)), ((), ())),
        preferred_element_type=jnp.float32) + ba2_ref[...]           # (C, T)
    scores = jnp.where(valid, scores, -1e30)
    scores_ref[...] = scores

    # online softmax over this split's instances + running acc = softmax(A) @ h
    m_prev = m_ref[0]                                                # (C, 1)
    m_new = jnp.maximum(m_prev, jnp.max(scores, axis=1, keepdims=True))
    alpha = jnp.exp(m_prev - m_new)                                  # (C, 1)
    p = jnp.where(valid, jnp.exp(scores - m_new), 0.0)               # (C, T)
    l_ref[0] = alpha * l_ref[0] + jnp.sum(p, axis=1, keepdims=True)
    acc_ref[0] = alpha * acc_ref[0] + jnp.dot(
        p.astype(jnp.bfloat16), h.astype(jnp.bfloat16),
        preferred_element_type=jnp.float32)                          # (C, 128)
    m_ref[0] = m_new


# ---------------------------------------------------------------------------
# pallas_call wrapper
# ---------------------------------------------------------------------------
def _main_call(features, wcat, bcat, wa2t, ba2, *, tile_n, num_splits):
    n = features.shape[0]
    n_tiles = pl.cdiv(n, tile_n)
    n_splits = max(1, min(num_splits, n_tiles))
    tps = pl.cdiv(n_tiles, n_splits)
    padded_w = n_splits * tps * tile_n
    last_blk = n_tiles - 1

    def feat_map(s, t):
        # clamp so over-provisioned tiles of the last split never DMA a fully
        # out-of-bounds block (their rows are masked to zero in-kernel anyway)
        return (jnp.minimum(s * tps + t, last_blk), 0)

    cost = pl.CostEstimate(
        flops=2 * n * (IN_DIM * 2 * HID + 2 * N_CLASSES * HID),
        transcendentals=n * (HID + N_CLASSES),
        bytes_accessed=(n * IN_DIM * 4 + padded_w * N_CLASSES * 4
                        + (IN_DIM * 2 * HID + N_CLASSES * HID) * 2
                        + n_splits * N_CLASSES * (HID + 2) * 4),
    )

    kernel = functools.partial(clam_mb_main_kernel, n=n, tile_n=tile_n,
                               tiles_per_split=tps)

    return pl.pallas_call(
        kernel,
        grid=(n_splits, tps),
        in_specs=[
            pl.BlockSpec((tile_n, IN_DIM), feat_map),                  # features f32
            pl.BlockSpec((IN_DIM, 2 * HID), lambda s, t: (0, 0)),      # [Wfc|Wfc@Wa1]
            pl.BlockSpec((1, 2 * HID), lambda s, t: (0, 0)),           # fused bias
            pl.BlockSpec((N_CLASSES, HID), lambda s, t: (0, 0)),       # Wa2^T
            pl.BlockSpec((N_CLASSES, 1), lambda s, t: (0, 0)),         # ba2
        ],
        out_specs=(
            pl.BlockSpec((N_CLASSES, tile_n), lambda s, t: (0, s * tps + t)),
            pl.BlockSpec((1, N_CLASSES, 1), lambda s, t: (s, 0, 0)),   # m partial
            pl.BlockSpec((1, N_CLASSES, 1), lambda s, t: (s, 0, 0)),   # l partial
            pl.BlockSpec((1, N_CLASSES, HID), lambda s, t: (s, 0, 0)),  # acc partial
        ),
        out_shape=(
            jax.ShapeDtypeStruct((N_CLASSES, padded_w), jnp.float32),
            jax.ShapeDtypeStruct((n_splits, N_CLASSES, 1), jnp.float32),
            jax.ShapeDtypeStruct((n_splits, N_CLASSES, 1), jnp.float32),
            jax.ShapeDtypeStruct((n_splits, N_CLASSES, HID), jnp.float32),
        ),
        compiler_params=pltpu.CompilerParams(
            dimension_semantics=("parallel", "arbitrary"),
            vmem_limit_bytes=48 * 1024 * 1024),
        cost_estimate=cost,
    )(features, wcat, bcat, wa2t, ba2)


@functools.partial(jax.jit, static_argnames=("tile_n", "num_splits"))
def clam_mb_forward(features, label, params, *, tile_n=2048, num_splits=2):
    (wfc, bfc, wa1, ba1, wa2, ba2, wc, bc, wi, bi) = params
    n = features.shape[0]

    # lane-aligned tile; don't exceed the (rounded-up) bag size
    t = max(128, (tile_n // 128) * 128)
    t = min(t, ((n + 127) // 128) * 128)

    # fused weights: one 256-wide matmul yields h and the pre-tanh attn hidden
    w2 = wfc @ wa1                                                   # (512, 128)
    wcat = jnp.concatenate([wfc, w2], axis=1).astype(jnp.bfloat16)   # (512, 256)
    bcat = jnp.concatenate([bfc, bfc @ wa1 + ba1], axis=1)           # (1, 256) f32

    scores_pad, m_part, l_part, acc_part = _main_call(
        features, wcat, bcat, wa2.T.astype(jnp.bfloat16), ba2,
        tile_n=t, num_splits=num_splits)

    scores = scores_pad[:, :n]                                       # (C, N)

    # merge per-split online-softmax partials (flash-attention style)
    m_bag = jnp.max(m_part, axis=0)                                  # (C, 1)
    w_s = jnp.exp(m_part - m_bag)                                    # (S, C, 1)
    l_bag = jnp.sum(w_s * l_part, axis=0)                            # (C, 1)
    acc_bag = jnp.sum(w_s * acc_part, axis=0)                        # (C, 128)
    m_vec = acc_bag / l_bag                                          # softmax(A) @ h
    logits = jnp.sum(m_vec * wc, axis=1) + bc[:, 0]                  # (C,)

    # top-k / bottom-k instance selection per class (softmax is monotone, so
    # raw scores give identical indices to softmaxed attention)
    _, top_p = jax.lax.top_k(scores, K_SAMPLE)                       # (C, K)
    _, top_n = jax.lax.top_k(-scores, K_SAMPLE)                      # (C, K)
    ids = jnp.concatenate([top_p, top_n], axis=1)                    # (C, 2K)

    # recompute h only for the C*2K selected rows, in plain f32 JAX
    feat_sel = features[ids]                                         # (C, 2K, 512)
    h_sel = jnp.einsum('ckd,df->ckf', feat_sel, wfc) + bfc           # (C, 2K, 128)
    inst_logits = jnp.einsum('ckf,cfo->cko', h_sel, wi) + bi         # (C, 2K, 2)

    # CE vs implicit targets [1]*K (top-k) then [0]*K (bottom-k)
    is_pos = jnp.arange(2 * K_SAMPLE) < K_SAMPLE                     # (2K,)
    tgt = jnp.where(is_pos, inst_logits[..., 1], inst_logits[..., 0])
    mx = jnp.max(inst_logits, axis=-1)
    lse = mx + jnp.log(jnp.sum(jnp.exp(inst_logits - mx[..., None]), axis=-1))
    losses = jnp.mean(lse - tgt, axis=1)                             # (C,)

    # only classes with label == 1 contribute (subtyping=False)
    total_inst_loss = jnp.sum(jnp.where(label == 1, losses, 0.0))
    return logits, total_inst_loss


# ---------------------------------------------------------------------------
# Deterministic parameter init (xavier_normal_ weights, zero biases)
# ---------------------------------------------------------------------------
def _xavier_normal(key, fan_in, fan_out):
    std = (2.0 / (fan_in + fan_out)) ** 0.5
    return std * jax.random.normal(key, (fan_in, fan_out), dtype=jnp.float32)


def init_params(key):
    ks = jax.random.split(key, 8)
    wfc = _xavier_normal(ks[0], IN_DIM, HID)
    bfc = jnp.zeros((1, HID), jnp.float32)
    wa1 = _xavier_normal(ks[1], HID, HID)
    ba1 = jnp.zeros((1, HID), jnp.float32)
    wa2 = _xavier_normal(ks[2], HID, N_CLASSES)          # (128, C)
    ba2 = jnp.zeros((N_CLASSES, 1), jnp.float32)
    # bag classifiers: n_classes x Linear(128, 1) stacked -> (C, 128)
    wc = _xavier_normal(ks[3], HID, N_CLASSES).T
    bc = jnp.zeros((N_CLASSES, 1), jnp.float32)
    # instance classifiers: n_classes x Linear(128, 2)
    wi = jnp.stack([_xavier_normal(k, HID, 2)
                    for k in jax.random.split(ks[4], N_CLASSES)])   # (C, 128, 2)
    bi = jnp.zeros((N_CLASSES, 1, 2), jnp.float32)
    return (wfc, bfc, wa1, ba1, wa2, ba2, wc, bc, wi, bi)


if __name__ == "__main__":
    key = jax.random.PRNGKey(0)
    k_feat, k_param = jax.random.split(key)

    # N not a tile multiple -> exercises masking, clamped over-provisioned
    # tiles and the 2-way split / partial-merge path
    N = 300
    features = jax.random.normal(k_feat, (N, IN_DIM), dtype=jnp.float32)
    label = jnp.array([1, 0, 1, 0], dtype=jnp.int32)
    params = init_params(k_param)

    logits, total_inst_loss = clam_mb_forward(features, label, params,
                                              tile_n=128, num_splits=2)
    jax.block_until_ready((logits, total_inst_loss))

    assert logits.shape == (N_CLASSES,)
    assert total_inst_loss.shape == ()
    assert bool(jnp.all(jnp.isfinite(logits)))
    assert bool(jnp.isfinite(total_inst_loss))
    print("KERNEL_OK")
</pallas_src>

<mosaic_0001>
module attributes {stable_mosaic.version = 11 : i64} {
  func.func @clam_mb_main_kernel(%arg0: i32, %arg1: i32, %arg2: memref<128x512xf32, #tpu.memory_space<vmem>>, %arg3: memref<512x256xbf16, #tpu.memory_space<vmem>>, %arg4: memref<1x256xf32, #tpu.memory_space<vmem>>, %arg5: memref<4x128xbf16, #tpu.memory_space<vmem>>, %arg6: memref<4x1xf32, #tpu.memory_space<vmem>>, %arg7: memref<4x128xf32, #tpu.memory_space<vmem>>, %arg8: memref<1x4x1xf32, #tpu.memory_space<vmem>>, %arg9: memref<1x4x1xf32, #tpu.memory_space<vmem>>, %arg10: memref<1x4x128xf32, #tpu.memory_space<vmem>>) attributes {dimension_semantics = [#tpu.dimension_semantics<parallel>, #tpu.dimension_semantics<arbitrary>], iteration_bounds = array<i64: 2, 2>, scalar_prefetch = 0 : i64, scratch_operands = 0 : i64, tpu.core_type = #tpu.core_type<tc>, window_params = [{transform_indices = @transform_0, window_bounds = array<i64: 128, 512>}, {pipeline_mode = #tpu.pipeline_mode<synchronous>, transform_indices = @transform_1, window_bounds = array<i64: 512, 256>}, {pipeline_mode = #tpu.pipeline_mode<synchronous>, transform_indices = @transform_2, window_bounds = array<i64: 1, 256>}, {pipeline_mode = #tpu.pipeline_mode<synchronous>, transform_indices = @transform_3, window_bounds = array<i64: 4, 128>}, {pipeline_mode = #tpu.pipeline_mode<synchronous>, transform_indices = @transform_4, window_bounds = array<i64: 4, 1>}, {transform_indices = @transform_5, window_bounds = array<i64: 4, 128>}, {transform_indices = @transform_6, window_bounds = array<i64: 1, 4, 1>}, {transform_indices = @transform_7, window_bounds = array<i64: 1, 4, 1>}, {transform_indices = @transform_8, window_bounds = array<i64: 1, 4, 128>}]} {
    %c0_i32 = arith.constant 0 : i32
    %0 = arith.cmpi eq, %arg1, %c0_i32 : i32
    %1 = arith.extui %0 : i1 to i32
    %c0_i32_0 = arith.constant 0 : i32
    %2 = arith.cmpi ne, %1, %c0_i32_0 : i32
    scf.if %2 {
      %cst_37 = arith.constant -1.000000e+30 : f32
      %74 = vector.broadcast %cst_37 : f32 to vector<1x4x1xf32>
      %c0_38 = arith.constant 0 : index
      %c0_39 = arith.constant 0 : index
      %c0_40 = arith.constant 0 : index
      %75 = vector.load %arg8[%c0_38, %c0_39, %c0_40] : memref<1x4x1xf32, #tpu.memory_space<vmem>>, vector<1x4x1xf32>
      tpu.vector_store %arg8[%c0_38, %c0_39, %c0_40], %74 {strides = array<i32>} : memref<1x4x1xf32, #tpu.memory_space<vmem>>, vector<1x4x1xf32>,
      %cst_41 = arith.constant 0.000000e+00 : f32
      %76 = vector.broadcast %cst_41 : f32 to vector<1x4x1xf32>
      %c0_42 = arith.constant 0 : index
      %c0_43 = arith.constant 0 : index
      %c0_44 = arith.constant 0 : index
      %77 = vector.load %arg9[%c0_42, %c0_43, %c0_44] : memref<1x4x1xf32, #tpu.memory_space<vmem>>, vector<1x4x1xf32>
      tpu.vector_store %arg9[%c0_42, %c0_43, %c0_44], %76 {strides = array<i32>} : memref<1x4x1xf32, #tpu.memory_space<vmem>>, vector<1x4x1xf32>,
      %cst_45 = arith.constant 0.000000e+00 : f32
      %78 = vector.broadcast %cst_45 : f32 to vector<1x4x128xf32>
      %c0_46 = arith.constant 0 : index
      %c0_47 = arith.constant 0 : index
      %c0_48 = arith.constant 0 : index
      %79 = vector.load %arg10[%c0_46, %c0_47, %c0_48] : memref<1x4x128xf32, #tpu.memory_space<vmem>>, vector<1x4x128xf32>
      tpu.vector_store %arg10[%c0_46, %c0_47, %c0_48], %78 {strides = array<i32>} : memref<1x4x128xf32, #tpu.memory_space<vmem>>, vector<1x4x128xf32>,
    } else {
    }
    %c2_i32 = arith.constant 2 : i32
    %3 = arith.muli %arg0, %c2_i32 : i32
    %4 = arith.addi %3, %arg1 : i32
    %c128_i32 = arith.constant 128 : i32
    %5 = arith.muli %4, %c128_i32 : i32
    %6 = tpu.iota {dimensions = array<i32: 1>} : vector<1x128xi32>
    %7 = vector.broadcast %5 : i32 to vector<1x128xi32>
    %8 = arith.addi %7, %6 : vector<1x128xi32>
    %c300_i32 = arith.constant 300 : i32
    %9 = vector.broadcast %c300_i32 : i32 to vector<1x128xi32>
    %10 = arith.cmpi slt, %8, %9 : vector<1x128xi32>
    %c0 = arith.constant 0 : index
    %c0_1 = arith.constant 0 : index
    %11 = vector.load %arg2[%c0, %c0_1] : memref<128x512xf32, #tpu.memory_space<vmem>>, vector<128x512xf32>
    %12 = arith.truncf %11 : vector<128x512xf32> to vector<128x512xbf16>
    %c0_2 = arith.constant 0 : index
    %c0_3 = arith.constant 0 : index
    %13 = vector.load %arg3[%c0_2, %c0_3] : memref<512x256xbf16, #tpu.memory_space<vmem>>, vector<512x256xbf16>
    %cst = arith.constant dense<0.000000e+00> : vector<128x256xf32>
    %14 = tpu.matmul %12, %13, %cst {dimension_numbers = #tpu.dot_dimension_numbers<[1], [0], [0], [1], [0, 0, 1, 1], [], []>} : vector<128x512xbf16>, vector<512x256xbf16>, vector<128x256xf32> -> vector<128x256xf32>
    %c0_4 = arith.constant 0 : index
    %c0_5 = arith.constant 0 : index
    %15 = vector.load %arg4[%c0_4, %c0_5] : memref<1x256xf32, #tpu.memory_space<vmem>>, vector<1x256xf32>
    %16 = vector.broadcast %15 : vector<1x256xf32> to vector<128x256xf32>
    %17 = arith.addf %14, %16 : vector<128x256xf32>
    %18 = tpu.transpose %10, [1, 0] : vector<1x128xi1> -> vector<128x1xi1>
    %19 = vector.extract_strided_slice %17 {offsets = [0, 0], sizes = [128, 128], strides = [1, 1]} : vector<128x256xf32> to vector<128x128xf32>
    %cst_6 = arith.constant 0.000000e+00 : f32
    %20 = vector.shape_cast %18 : vector<128x1xi1> to vector<128x1xi1>
    %21 = vector.broadcast %20 : vector<128x1xi1> to vector<128x128xi1>
    %22 = vector.broadcast %cst_6 : f32 to vector<128x128xf32>
    %23 = arith.select %21, %19, %22 : vector<128x128xi1>, vector<128x128xf32>
    %24 = vector.extract_strided_slice %17 {offsets = [0, 128], sizes = [128, 128], strides = [1, 1]} : vector<128x256xf32> to vector<128x128xf32>
    %25 = math.tanh %24 : vector<128x128xf32>
    %26 = arith.truncf %25 : vector<128x128xf32> to vector<128x128xbf16>
    %c0_7 = arith.constant 0 : index
    %c0_8 = arith.constant 0 : index
    %27 = vector.load %arg5[%c0_7, %c0_8] : memref<4x128xbf16, #tpu.memory_space<vmem>>, vector<4x128xbf16>
    %cst_9 = arith.constant dense<0.000000e+00> : vector<4x128xf32>
    %28 = tpu.matmul %27, %26, %cst_9 {dimension_numbers = #tpu.dot_dimension_numbers<[1], [1], [0], [0], [0, 0, 1, 0], [], []>} : vector<4x128xbf16>, vector<128x128xbf16>, vector<4x128xf32> -> vector<4x128xf32>
    %c0_10 = arith.constant 0 : index
    %c0_11 = arith.constant 0 : index
    %29 = vector.load %arg6[%c0_10, %c0_11] : memref<4x1xf32, #tpu.memory_space<vmem>>, vector<4x1xf32>
    %30 = vector.broadcast %29 : vector<4x1xf32> to vector<4x128xf32>
    %31 = arith.addf %28, %30 : vector<4x128xf32>
    %cst_12 = arith.constant -1.000000e+30 : f32
    %32 = vector.shape_cast %10 : vector<1x128xi1> to vector<1x128xi1>
    %33 = vector.broadcast %32 : vector<1x128xi1> to vector<4x128xi1>
    %34 = vector.broadcast %cst_12 : f32 to vector<4x128xf32>
    %35 = arith.select %33, %31, %34 : vector<4x128xi1>, vector<4x128xf32>
    %c0_13 = arith.constant 0 : index
    %c0_14 = arith.constant 0 : index
    %36 = vector.load %arg7[%c0_13, %c0_14] : memref<4x128xf32, #tpu.memory_space<vmem>>, vector<4x128xf32>
    tpu.vector_store %arg7[%c0_13, %c0_14], %35 {strides = array<i32>} : memref<4x128xf32, #tpu.memory_space<vmem>>, vector<4x128xf32>,
    %c0_15 = arith.constant 0 : index
    %c0_16 = arith.constant 0 : index
    %c0_17 = arith.constant 0 : index
    %37 = vector.load %arg8[%c0_15, %c0_16, %c0_17] : memref<1x4x1xf32, #tpu.memory_space<vmem>>, vector<1x4x1xf32>
    %38 = vector.shape_cast %37 : vector<1x4x1xf32> to vector<4x1xf32>
    %cst_18 = arith.constant dense<0xFF800000> : vector<4xf32>
    %39 = vector.multi_reduction <maximumf>, %35, %cst_18 [1] : vector<4x128xf32> to vector<4xf32>
    %40 = vector.shape_cast %39 : vector<4xf32> to vector<4x1xf32>
    %41 = arith.maximumf %38, %40 : vector<4x1xf32>
    %42 = arith.subf %38, %41 : vector<4x1xf32>
    %43 = math.exp %42 : vector<4x1xf32>
    %44 = vector.broadcast %41 : vector<4x1xf32> to vector<4x128xf32>
    %45 = arith.subf %35, %44 : vector<4x128xf32>
    %46 = math.exp %45 : vector<4x128xf32>
    %cst_19 = arith.constant 0.000000e+00 : f32
    %47 = vector.shape_cast %10 : vector<1x128xi1> to vector<1x128xi1>
    %48 = vector.broadcast %47 : vector<1x128xi1> to vector<4x128xi1>
    %49 = vector.broadcast %cst_19 : f32 to vector<4x128xf32>
    %50 = arith.select %48, %46, %49 : vector<4x128xi1>, vector<4x128xf32>
    %c0_20 = arith.constant 0 : index
    %c0_21 = arith.constant 0 : index
    %c0_22 = arith.constant 0 : index
    %51 = vector.load %arg9[%c0_20, %c0_21, %c0_22] : memref<1x4x1xf32, #tpu.memory_space<vmem>>, vector<1x4x1xf32>
    %52 = vector.shape_cast %51 : vector<1x4x1xf32> to vector<4x1xf32>
    %53 = arith.mulf %43, %52 : vector<4x1xf32>
    %cst_23 = arith.constant dense<0.000000e+00> : vector<4xf32>
    %54 = vector.multi_reduction <add>, %50, %cst_23 [1] : vector<4x128xf32> to vector<4xf32>
    %55 = vector.shape_cast %54 : vector<4xf32> to vector<4x1xf32>
    %56 = arith.addf %53, %55 : vector<4x1xf32>
    %c0_24 = arith.constant 0 : index
    %c0_25 = arith.constant 0 : index
    %c0_26 = arith.constant 0 : index
    %57 = vector.load %arg9[%c0_24, %c0_25, %c0_26] : memref<1x4x1xf32, #tpu.memory_space<vmem>>, vector<1x4x1xf32>
    %58 = vector.shape_cast %57 : vector<1x4x1xf32> to vector<4x1xf32>
    %59 = vector.shape_cast %56 : vector<4x1xf32> to vector<1x4x1xf32>
    tpu.vector_store %arg9[%c0_24, %c0_25, %c0_26], %59 {strides = array<i32>} : memref<1x4x1xf32, #tpu.memory_space<vmem>>, vector<1x4x1xf32>,
    %c0_27 = arith.constant 0 : index
    %c0_28 = arith.constant 0 : index
    %c0_29 = arith.constant 0 : index
    %60 = vector.load %arg10[%c0_27, %c0_28, %c0_29] : memref<1x4x128xf32, #tpu.memory_space<vmem>>, vector<1x4x128xf32>
    %61 = vector.shape_cast %60 : vector<1x4x128xf32> to vector<4x128xf32>
    %62 = vector.broadcast %43 : vector<4x1xf32> to vector<4x128xf32>
    %63 = arith.mulf %62, %61 : vector<4x128xf32>
    %64 = arith.truncf %50 : vector<4x128xf32> to vector<4x128xbf16>
    %65 = arith.truncf %23 : vector<128x128xf32> to vector<128x128xbf16>
    %cst_30 = arith.constant dense<0.000000e+00> : vector<4x128xf32>
    %66 = tpu.matmul %64, %65, %cst_30 {dimension_numbers = #tpu.dot_dimension_numbers<[1], [0], [0], [1], [0, 0, 1, 1], [], []>} : vector<4x128xbf16>, vector<128x128xbf16>, vector<4x128xf32> -> vector<4x128xf32>
    %67 = arith.addf %63, %66 : vector<4x128xf32>
    %c0_31 = arith.constant 0 : index
    %c0_32 = arith.constant 0 : index
    %c0_33 = arith.constant 0 : index
    %68 = vector.load %arg10[%c0_31, %c0_32, %c0_33] : memref<1x4x128xf32, #tpu.memory_space<vmem>>, vector<1x4x128xf32>
    %69 = vector.shape_cast %68 : vector<1x4x128xf32> to vector<4x128xf32>
    %70 = vector.shape_cast %67 : vector<4x128xf32> to vector<1x4x128xf32>
    tpu.vector_store %arg10[%c0_31, %c0_32, %c0_33], %70 {strides = array<i32>} : memref<1x4x128xf32, #tpu.memory_space<vmem>>, vector<1x4x128xf32>,
    %c0_34 = arith.constant 0 : index
    %c0_35 = arith.constant 0 : index
    %c0_36 = arith.constant 0 : index
    %71 = vector.load %arg8[%c0_34, %c0_35, %c0_36] : memref<1x4x1xf32, #tpu.memory_space<vmem>>, vector<1x4x1xf32>
    %72 = vector.shape_cast %71 : vector<1x4x1xf32> to vector<4x1xf32>
    %73 = vector.shape_cast %41 : vector<4x1xf32> to vector<1x4x1xf32>
    tpu.vector_store %arg8[%c0_34, %c0_35, %c0_36], %73 {strides = array<i32>} : memref<1x4x1xf32, #tpu.memory_space<vmem>>, vector<1x4x1xf32>,
    return
  }
  func.func @transform_0(%arg0: i32, %arg1: i32) -> (i32, i32) {
    %c2_i32 = arith.constant 2 : i32
    %0 = arith.muli %arg0, %c2_i32 : i32
    %1 = arith.addi %0, %arg1 : i32
    %c2_i32_0 = arith.constant 2 : i32
    %2 = arith.minsi %1, %c2_i32_0 : i32
    %c0_i32 = arith.constant 0 : i32
    %c0_i32_1 = arith.constant 0 : i32
    return %2, %c0_i32 : i32, i32
  }
  func.func @transform_1(%arg0: i32, %arg1: i32) -> (i32, i32) {
    %c0_i32 = arith.constant 0 : i32
    %c0_i32_0 = arith.constant 0 : i32
    %c0_i32_1 = arith.constant 0 : i32
    return %c0_i32, %c0_i32_0 : i32, i32
  }
  func.func @transform_2(%arg0: i32, %arg1: i32) -> (i32, i32) {
    %c0_i32 = arith.constant 0 : i32
    %c0_i32_0 = arith.constant 0 : i32
    %c0_i32_1 = arith.constant 0 : i32
    return %c0_i32, %c0_i32_0 : i32, i32
  }
  func.func @transform_3(%arg0: i32, %arg1: i32) -> (i32, i32) {
    %c0_i32 = arith.constant 0 : i32
    %c0_i32_0 = arith.constant 0 : i32
    %c0_i32_1 = arith.constant 0 : i32
    return %c0_i32, %c0_i32_0 : i32, i32
  }
  func.func @transform_4(%arg0: i32, %arg1: i32) -> (i32, i32) {
    %c0_i32 = arith.constant 0 : i32
    %c0_i32_0 = arith.constant 0 : i32
    %c0_i32_1 = arith.constant 0 : i32
    return %c0_i32, %c0_i32_0 : i32, i32
  }
  func.func @transform_5(%arg0: i32, %arg1: i32) -> (i32, i32) {
    %c2_i32 = arith.constant 2 : i32
    %0 = arith.muli %arg0, %c2_i32 : i32
    %1 = arith.addi %0, %arg1 : i32
    %c0_i32 = arith.constant 0 : i32
    %c0_i32_0 = arith.constant 0 : i32
    return %c0_i32, %1 : i32, i32
  }
  func.func @transform_6(%arg0: i32, %arg1: i32) -> (i32, i32, i32) {
    %c0_i32 = arith.constant 0 : i32
    %c0_i32_0 = arith.constant 0 : i32
    %c0_i32_1 = arith.constant 0 : i32
    return %arg0, %c0_i32, %c0_i32_0 : i32, i32, i32
  }
  func.func @transform_7(%arg0: i32, %arg1: i32) -> (i32, i32, i32) {
    %c0_i32 = arith.constant 0 : i32
    %c0_i32_0 = arith.constant 0 : i32
    %c0_i32_1 = arith.constant 0 : i32
    return %arg0, %c0_i32, %c0_i32_0 : i32, i32, i32
  }
  func.func @transform_8(%arg0: i32, %arg1: i32) -> (i32, i32, i32) {
    %c0_i32 = arith.constant 0 : i32
    %c0_i32_0 = arith.constant 0 : i32
    %c0_i32_1 = arith.constant 0 : i32
    return %arg0, %c0_i32, %c0_i32_0 : i32, i32, i32
  }
}

</mosaic_0001>

<bundles_post_ra>
// kernel: clam_mb_forward.1
= control target key start
LH: loop header
LB: loop body
LE: loop exit
PB: predicated region body
PF: predicated region fallthrough
CT: control target
= control target key end

     0   :  { %s2209_s27 = smov 0   ;;  %s2211_s28 = smov 0   ;;  %s2785_s0 = inlined_call_operand.vmem [shape: f32[300,512], index: 0, kind: input, shape index: {}]   ;;  %s2786_s1 = inlined_call_operand.vmem [shape: bf16[512,256], index: 1, kind: input, shape index: {}]   ;;  %s2787_s2 = inlined_call_operand.vmem [shape: f32[1,256], index: 2, kind: input, shape index: {}]   ;;  %s2788_s3 = inlined_call_operand.vmem [shape: bf16[4,128], index: 3, kind: input, shape index: {}]   ;;  %s2789_s4 = inlined_call_operand.vmem [shape: f32[4,1], index: 4, kind: input, shape index: {}]   ;;  %s2790_s5 = inlined_call_operand.vmem [shape: f32[4,512], index: 5, kind: output, shape index: {0}]   ;;  %s2791_s6 = inlined_call_operand.vmem [shape: f32[2,4,1], index: 6, kind: output, shape index: {1}]   ;;  %s2792_s7 = inlined_call_operand.vmem [shape: f32[2,4,1], index: 7, kind: output, shape index: {2}]   ;;  %s2793_s8 = inlined_call_operand.vmem [shape: f32[2,4,128], index: 8, kind: output, shape index: {3}]  }
   0x1   :  { %s2213_s29 = smov 0   ;;  %s2215_s30 = smov 0  }
   0x2   :  { %s2217_s9 = smov 0  }
   0x3 LB: > { %s28_s10 = sadd.s32 1, %s2149_s29  ;;  %s31_s11 = sadd.s32 1, %s2153_s30  ;;  %s2157_s9 = sphi %s2217_s9, %s19_s9   ;;  %s2153_s30 = sphi %s2215_s30, %s2801_s30   ;;  %s2149_s29 = sphi %s2213_s29, %s2800_s29   ;;  %s2145_s28 = sphi %s2211_s28, %s2799_s28   ;;  %s2141_s27 = sphi %s2209_s27, %s2798_s27  }
   0x4   : > { %p29_p0 = scmp.ge.s32.totalorder %s28_s10, 2  ;;  %p1711_p1 = scmp.ge.s32.totalorder %s2157_s9, 1 }
   0x5   : > { %p313_p2 = scmp.lt.s32.totalorder %s2157_s9, 5 }
   0x6   : > { %s2803_s10 = smov (%p29_p0, %s28_s10), 0  ;;  %s2805_s11 = smov (!%p29_p0, %s31_s11), %s2153_s30 }
   0x7   : > { %p314_p3 = pnand %p1711_p1, %p313_p2  ;;  %p33_p4 = scmp.ge.s32.totalorder %s2805_s11, 2 }
   0x8   : > { %s1712_s12 = sshll.u32 (!%p314_p3), %s2145_s28, 1  ;;  %p403_p5 = scmp.lt.s32.totalorder (!%p314_p3), %s2145_s28, 1 }
   0x9   : > { %s2807_s11 = smov (%p33_p4, %s2805_s11), 0  ;;  %317 = sbr.rel (%p314_p3) target bundleno = 1113 (0x459), region = 40 }
   0xa   : > { %2794 = sst [smem:[#allocation2_spill]] %s2807_s11  ;;  %s2242_s13 = sadd.s32 (!%p314_p3), %s2141_s27, %s1712_s12 }
   0xb   : > { %p372_p6 = scmp.lt.s32.totalorder (!%p314_p3), %s2242_s13, 2  ;;  %p397_p7 = scmp.lt.s32.totalorder (!%p314_p3), %s2242_s13, 3 }
   0xc   : > { %p1721_p9 = scmp.ne.s32.totalorder (!%p314_p3), %s2141_s27, 0 }
  0x10   : > { %s2809_s28 = smov (!%p403_p5, %s2145_s28), 1  ;;  %vm422_vm0 = vcmask (!%p1721_p9), 3072   ;;  %v2159_v0 = vmov (!%p1721_p9), -1e+30   ;;  %v2160_v1 = vmov (!%p1721_p9), 0.0  }
  0x11   : > { %s373_s14 = scalar_select %p372_p6, %s2242_s13, 2 }
  0x12   : > { %s398_s15 = scalar_select %p397_p7, %s2242_s13, 3 }
  0x13   : > { %s1713_s16 = sshll.u32 %s373_s14, 4  ;;  %s1718_s17 = sshll.u32 %s2809_s28, 2 }
  0x14   : > { %p380_p8 = scmp.lt.s32.totalorder %s1713_s16, 37  ;;  %s1717_s18 = sshll.u32 %s398_s15, 2 }
  0x15   : > { %s2251_s21 = scalar_lea.vmem %s2790_s5, %s1717_s18  ;;  %s2256_s24 = scalar_lea.vmem %s2791_s6, %s1718_s17 }
  0x16   : > { %s2811_s16 = smov (!%p380_p8, %s1713_s16), 37  ;;  %s2261_s12 = scalar_lea.vmem %s2792_s7, %s1718_s17  ;;  %423 = vst.msk [vmem:[%s2256_s24] sm:$0xf] (!%p1721_p9), %vm422_vm0, %v2159_v0 }
  0x17   : > { %s2266_s15 = scalar_lea.vmem %s2793_s8, %s1718_s17  ;;  %s1817_s11 = sshll.u32 %s2811_s16, 5  ;;  %424 = vst.msk [vmem:[%s2261_s12] sm:$0xf] (!%p1721_p9), %vm422_vm0, %v2160_v1 }
  0x18   : > { %s2271_s20 = scalar_lea.vmem %s2785_s0, %s1817_s11  ;;  %421 = sbr.rel (%p1721_p9) target bundleno = 31 (0x1f), region = 44  ;;  %425 = vst [vmem:[%s2266_s15] sm:$0xf] (!%p1721_p9), %v2160_v1 }
  0x1f PF: > { %v1987_v2 = vld [vmem:[%s2786_s1 + $0x4] ss:$8 sps:$4 sm:$0xff]   ;;  %v2161_v4 = vmov 0   ;;  %v1991_v5 = vld [vmem:[%s2786_s1] ss:$8 sps:$4 sm:$0xff]   ;;  %v437_v51 = vld [vmem:[%s2271_s20 + $0x18] sm:$0xff] }
  0x20   : > { %v1989_v3 = vld [vmem:[%s2786_s1 + $0x104] ss:$8 sps:$4 sm:$0xff]   ;;  %1985 = vset.pattern.permute.xlu0 %v2161_v4  ;;  %1986 = vset.pattern.permute.xlu1 %v2161_v4  ;;  %v1992_v6 = vld [vmem:[%s2786_s1 + $0x100] ss:$8 sps:$4 sm:$0xff]   ;;  %v1993_v7 = vld [vmem:[%s2786_s1 + $0x14] ss:$8 sps:$4 sm:$0xff]  }
  0x21   : > { %926 = vmatprep.subr.bf16.mxu1 %v1987_v2  ;;  %1039 = vmatprep.subr.bf16.mxu0 %v1989_v3  ;;  %v1995_v8 = vld [vmem:[%s2786_s1 + $0x114] ss:$8 sps:$4 sm:$0xff]   ;;  %v1997_v9 = vld [vmem:[%s2786_s1 + $0x10] ss:$8 sps:$4 sm:$0xff]   ;;  %v1999_v11 = vld [vmem:[%s2786_s1 + $0x24] ss:$8 sps:$4 sm:$0xff]  }
  0x22   : > { %927 = vmatpush1.bf16.msra.mxu1 %v1991_v5  ;;  %1040 = vmatpush1.bf16.msra.mxu0 %v1992_v6  ;;  %v1998_v10 = vld [vmem:[%s2786_s1 + $0x110] ss:$8 sps:$4 sm:$0xff]   ;;  %v2001_v12 = vld [vmem:[%s2786_s1 + $0x124] ss:$8 sps:$4 sm:$0xff]   ;;  %v2003_v13 = vld [vmem:[%s2786_s1 + $0x20] ss:$8 sps:$4 sm:$0xff]  }
  0x23   : > { %928 = vmatprep.subr.bf16.mxu1 %v1993_v7  ;;  %1041 = vmatprep.subr.bf16.mxu0 %v1995_v8  ;;  %v2004_v14 = vld [vmem:[%s2786_s1 + $0x120] ss:$8 sps:$4 sm:$0xff]   ;;  %v2005_v15 = vld [vmem:[%s2786_s1 + $0x34] ss:$8 sps:$4 sm:$0xff]   ;;  %v2009_v17 = vld [vmem:[%s2786_s1 + $0x30] ss:$8 sps:$4 sm:$0xff]  }
  0x24   : > { %v2007_v16 = vld [vmem:[%s2786_s1 + $0x134] ss:$8 sps:$4 sm:$0xff]   ;;  %v2010_v18 = vld [vmem:[%s2786_s1 + $0x130] ss:$8 sps:$4 sm:$0xff]   ;;  %v2011_v19 = vld [vmem:[%s2786_s1 + $0x44] ss:$8 sps:$4 sm:$0xff]  }
  0x25   : > { %v2013_v20 = vld [vmem:[%s2786_s1 + $0x144] ss:$8 sps:$4 sm:$0xff]   ;;  %v2015_v21 = vld [vmem:[%s2786_s1 + $0x40] ss:$8 sps:$4 sm:$0xff]   ;;  %v2017_v23 = vld [vmem:[%s2786_s1 + $0x54] ss:$8 sps:$4 sm:$0xff]  }
  0x26   : > { %929 = vmatpush1.bf16.msra.mxu1 %v1997_v9  ;;  %1042 = vmatpush1.bf16.msra.mxu0 %v1998_v10  ;;  %v2016_v22 = vld [vmem:[%s2786_s1 + $0x140] ss:$8 sps:$4 sm:$0xff]   ;;  %v2019_v24 = vld [vmem:[%s2786_s1 + $0x154] ss:$8 sps:$4 sm:$0xff]   ;;  %v2021_v25 = vld [vmem:[%s2786_s1 + $0x50] ss:$8 sps:$4 sm:$0xff]  }
  0x27   : > { %930 = vmatprep.subr.bf16.mxu1 %v1999_v11  ;;  %1043 = vmatprep.subr.bf16.mxu0 %v2001_v12  ;;  %v2022_v26 = vld [vmem:[%s2786_s1 + $0x150] ss:$8 sps:$4 sm:$0xff]   ;;  %v2023_v27 = vld [vmem:[%s2786_s1 + $0x64] ss:$8 sps:$4 sm:$0xff]   ;;  %v2027_v29 = vld [vmem:[%s2786_s1 + $0x60] ss:$8 sps:$4 sm:$0xff]  }
  0x28   : > { %v2025_v28 = vld [vmem:[%s2786_s1 + $0x164] ss:$8 sps:$4 sm:$0xff]   ;;  %v2028_v30 = vld [vmem:[%s2786_s1 + $0x160] ss:$8 sps:$4 sm:$0xff]   ;;  %v2029_v31 = vld [vmem:[%s2786_s1 + $0x74] ss:$8 sps:$4 sm:$0xff]  }
  0x29   : > { %v2031_v32 = vld [vmem:[%s2786_s1 + $0x174] ss:$8 sps:$4 sm:$0xff]   ;;  %v2033_v33 = vld [vmem:[%s2786_s1 + $0x70] ss:$8 sps:$4 sm:$0xff]   ;;  %v2035_v35 = vld [vmem:[%s2786_s1 + $0x84] ss:$8 sps:$4 sm:$0xff]  }
  0x2a   : > { %931 = vmatpush1.bf16.msra.mxu1 %v2003_v13  ;;  %1044 = vmatpush1.bf16.msra.mxu0 %v2004_v14  ;;  %v2034_v34 = vld [vmem:[%s2786_s1 + $0x170] ss:$8 sps:$4 sm:$0xff]   ;;  %v2037_v36 = vld [vmem:[%s2786_s1 + $0x184] ss:$8 sps:$4 sm:$0xff]   ;;  %v2039_v37 = vld [vmem:[%s2786_s1 + $0x80] ss:$8 sps:$4 sm:$0xff]  }
  0x2b   : > { %932 = vmatprep.subr.bf16.mxu1 %v2005_v15  ;;  %1045 = vmatprep.subr.bf16.mxu0 %v2007_v16  ;;  %v2040_v38 = vld [vmem:[%s2786_s1 + $0x180] ss:$8 sps:$4 sm:$0xff]   ;;  %v2041_v39 = vld [vmem:[%s2786_s1 + $0x94] ss:$8 sps:$4 sm:$0xff]   ;;  %v2045_v41 = vld [vmem:[%s2786_s1 + $0x90] ss:$8 sps:$4 sm:$0xff]  }
  0x2c   : > { %v2043_v40 = vld [vmem:[%s2786_s1 + $0x194] ss:$8 sps:$4 sm:$0xff]   ;;  %v2046_v42 = vld [vmem:[%s2786_s1 + $0x190] ss:$8 sps:$4 sm:$0xff]   ;;  %v2047_v43 = vld [vmem:[%s2786_s1 + $0xa4] ss:$8 sps:$4 sm:$0xff]  }
  0x2d   : > { %v2049_v44 = vld [vmem:[%s2786_s1 + $0x1a4] ss:$8 sps:$4 sm:$0xff]   ;;  %v2051_v45 = vld [vmem:[%s2786_s1 + $0xa0] ss:$8 sps:$4 sm:$0xff]   ;;  %v2053_v47 = vld [vmem:[%s2786_s1 + $0xb4] ss:$8 sps:$4 sm:$0xff]  }
  0x2e   : > { %933 = vmatpush1.bf16.msra.mxu1 %v2009_v17  ;;  %1046 = vmatpush1.bf16.msra.mxu0 %v2010_v18  ;;  %v2052_v46 = vld [vmem:[%s2786_s1 + $0x1a0] ss:$8 sps:$4 sm:$0xff]   ;;  %v2055_v48 = vld [vmem:[%s2786_s1 + $0x1b4] ss:$8 sps:$4 sm:$0xff]   ;;  %v2057_v53 = vld [vmem:[%s2786_s1 + $0xb0] ss:$8 sps:$4 sm:$0xff]  }
  0x2f   : > { %934 = vmatprep.subr.bf16.mxu1 %v2011_v19  ;;  %1047 = vmatprep.subr.bf16.mxu0 %v2013_v20  ;;  %v435_v49 = vld [vmem:[%s2271_s20 + $0x8] sm:$0xff]  ;;  %v441_v52 = vld [vmem:[%s2271_s20 + $0x38] sm:$0xff]  ;;  %v434_v10 = vld [vmem:[%s2271_s20] sm:$0xff]  ;;  %s1723_s19 = sshll.u32 %s2242_s13, 7  ;;  %vm2163_vm4 = vmmov 0  }
  0x30   : > { %v439_v50 = vld [vmem:[%s2271_s20 + $0x28] sm:$0xff]  ;;  %v2058_v54 = vld [vmem:[%s2786_s1 + $0x1b0] ss:$8 sps:$4 sm:$0xff]   ;;  %v501_v56 = vpack.c.bf16 %v441_v52, %v437_v51  ;;  %v2065_v61 = vld [vmem:[%s2786_s1 + $0xd4] ss:$8 sps:$4 sm:$0xff]  }
  0x31   : > { %v499_v55 = vpack.c.bf16 %v439_v50, %v435_v49  ;;  %v2059_v57 = vld [vmem:[%s2786_s1 + $0xc4] ss:$8 sps:$4 sm:$0xff]   ;;  %v2063_v59 = vld [vmem:[%s2786_s1 + $0xc0] ss:$8 sps:$4 sm:$0xff]   ;;  %v2067_v62 = vld [vmem:[%s2786_s1 + $0x1d4] ss:$8 sps:$4 sm:$0xff]  }
  0x32   : > { %935 = vmatpush1.bf16.msra.mxu1 %v2015_v21  ;;  %1048 = vmatpush1.bf16.msra.mxu0 %v2016_v22  ;;  %v2061_v58 = vld [vmem:[%s2786_s1 + $0x1c4] ss:$8 sps:$4 sm:$0xff]   ;;  %v2064_v60 = vld [vmem:[%s2786_s1 + $0x1c0] ss:$8 sps:$4 sm:$0xff]   ;;  %v2069_v63 = vld [vmem:[%s2786_s1 + $0xd0] ss:$8 sps:$4 sm:$0xff]  }
  0x33   : > { %936 = vmatprep.subr.bf16.mxu1 %v2017_v23  ;;  %1049 = vmatprep.subr.bf16.mxu0 %v2019_v24  ;;  %v2070_v0 = vld [vmem:[%s2786_s1 + $0x1d0] ss:$8 sps:$4 sm:$0xff]   ;;  %v2071_v1 = vld [vmem:[%s2786_s1 + $0xe4] ss:$8 sps:$4 sm:$0xff]   ;;  %v2075_v3 = vld [vmem:[%s2786_s1 + $0xe0] ss:$8 sps:$4 sm:$0xff]  }
  0x34   : > { %958 = vmatprep.mubr.bf16.mxu1 %v499_v55  ;;  %1071 = vmatprep.mubr.bf16.mxu0 %v501_v56  ;;  %v2073_v2 = vld [vmem:[%s2786_s1 + $0x1e4] ss:$8 sps:$4 sm:$0xff]   ;;  %v2076_v5 = vld [vmem:[%s2786_s1 + $0x1e0] ss:$8 sps:$4 sm:$0xff]   ;;  %v2077_v6 = vld [vmem:[%s2786_s1 + $0xf4] ss:$8 sps:$4 sm:$0xff]  }
  0x35   : > { %v2079_v7 = vld [vmem:[%s2786_s1 + $0x1f4] ss:$8 sps:$4 sm:$0xff]   ;;  %v2081_v8 = vld [vmem:[%s2786_s1 + $0xf0] ss:$8 sps:$4 sm:$0xff]   ;;  %v438_v11 = vld [vmem:[%s2271_s20 + $0x20] sm:$0xff] }
  0x36   : > { %937 = vmatpush1.bf16.msra.mxu1 %v2021_v25  ;;  %1050 = vmatpush1.bf16.msra.mxu0 %v2022_v26  ;;  %v2082_v9 = vld [vmem:[%s2786_s1 + $0x1f0] ss:$8 sps:$4 sm:$0xff]   ;;  %v443_v14 = vld [vmem:[%s2271_s20 + $0x48] sm:$0xff]  ;;  %v498_v18 = vpack.c.bf16 %v438_v11, %v434_v10  ;;  %v442_v22 = vld [vmem:[%s2271_s20 + $0x40] sm:$0xff] }
  0x37   : > { %938 = vmatprep.subr.bf16.mxu1 %v2023_v27  ;;  %1051 = vmatprep.subr.bf16.mxu0 %v2025_v28  ;;  %v436_v12 = vld [vmem:[%s2271_s20 + $0x10] sm:$0xff]  ;;  %v447_v15 = vld [vmem:[%s2271_s20 + $0x68] sm:$0xff]  ;;  %v445_v16 = vld [vmem:[%s2271_s20 + $0x58] sm:$0xff] }
  0x38   : > { %v440_v13 = vld [vmem:[%s2271_s20 + $0x30] sm:$0xff]  ;;  %v449_v17 = vld [vmem:[%s2271_s20 + $0x78] sm:$0xff]  ;;  %v503_v20 = vpack.c.bf16 %v447_v15, %v443_v14  ;;  %v446_v23 = vld [vmem:[%s2271_s20 + $0x60] sm:$0xff] }
  0x39   : > { %v500_v19 = vpack.c.bf16 %v440_v13, %v436_v12  ;;  %v505_v21 = vpack.c.bf16 %v449_v17, %v445_v16  ;;  %v444_v24 = vld [vmem:[%s2271_s20 + $0x50] sm:$0xff]  ;;  %v451_v26 = vld [vmem:[%s2271_s20 + $0x88] sm:$0xff]  ;;  %v453_v28 = vld [vmem:[%s2271_s20 + $0x98] sm:$0xff] }
  0x3a   : > { %939 = vmatpush1.bf16.msra.mxu1 %v2027_v29  ;;  %1052 = vmatpush1.bf16.msra.mxu0 %v2028_v30  ;;  %v448_v25 = vld [vmem:[%s2271_s20 + $0x70] sm:$0xff]  ;;  %v455_v27 = vld [vmem:[%s2271_s20 + $0xa8] sm:$0xff]  ;;  %v457_v29 = vld [vmem:[%s2271_s20 + $0xb8] sm:$0xff]  ;;  %v502_v30 = vpack.c.bf16 %v446_v23, %v442_v22 }
  0x3b   : > { %940 = vmatprep.subr.bf16.mxu1 %v2029_v31  ;;  %1053 = vmatprep.subr.bf16.mxu0 %v2031_v32  ;;  %v504_v31 = vpack.c.bf16 %v448_v25, %v444_v24  ;;  %v507_v32 = vpack.c.bf16 %v455_v27, %v451_v26  ;;  %v464_v49 = vld [vmem:[%s2271_s20 + $0xf0] sm:$0xff]  ;;  %v467_v50 = vld [vmem:[%s2271_s20 + $0x108] sm:$0xff]  ;;  %v469_v52 = vld [vmem:[%s2271_s20 + $0x118] sm:$0xff] }
  0x3c   : > { %v471_v51 = vld [vmem:[%s2271_s20 + $0x128] sm:$0xff]  ;;  %v480_v10 = vld [vmem:[%s2271_s20 + $0x170] sm:$0xff]  ;;  %v485_v13 = vld [vmem:[%s2271_s20 + $0x198] sm:$0xff] }
  0x3d   : > { %v515_v56 = vpack.c.bf16 %v471_v51, %v467_v50  ;;  %v483_v11 = vld [vmem:[%s2271_s20 + $0x188] sm:$0xff]  ;;  %v489_v14 = vld [vmem:[%s2271_s20 + $0x1b8] sm:$0xff]  ;;  %v488_v22 = vld [vmem:[%s2271_s20 + $0x1b0] sm:$0xff] }
  0x3e   : > { %941 = vmatpush1.bf16.msra.mxu1 %v2033_v33  ;;  %1054 = vmatpush1.bf16.msra.mxu0 %v2034_v34  ;;  %v509_v33 = vpack.c.bf16 %v457_v29, %v453_v28  ;;  %v450_v34 = vld [vmem:[%s2271_s20 + $0x80] sm:$0xff]  ;;  %v487_v12 = vld [vmem:[%s2271_s20 + $0x1a8] sm:$0xff]  ;;  %v493_v25 = vld [vmem:[%s2271_s20 + $0x1d8] sm:$0xff] }
  0x3f   : > { %942 = vmatprep.subr.bf16.mxu1 %v2035_v35  ;;  %1055 = vmatprep.subr.bf16.mxu0 %v2037_v36  ;;  %v454_v35 = vld [vmem:[%s2271_s20 + $0xa0] sm:$0xff]  ;;  %v452_v36 = vld [vmem:[%s2271_s20 + $0x90] sm:$0xff]  ;;  %v523_v17 = vpack.c.bf16 %v487_v12, %v483_v11  ;;  %v491_v23 = vld [vmem:[%s2271_s20 + $0x1c8] sm:$0xff] }
  0x40   : > { %v495_v24 = vld [vmem:[%s2271_s20 + $0x1e8] sm:$0xff]  ;;  %v497_v26 = vld [vmem:[%s2271_s20 + $0x1f8] sm:$0xff] }
  0x41   : > { %v527_v29 = vpack.c.bf16 %v495_v24, %v491_v23 }
  0x42   : > { %943 = vmatpush1.bf16.msra.mxu1 %v2039_v37  ;;  %1056 = vmatpush1.bf16.msra.mxu0 %v2040_v38  ;;  %v456_v37 = vld [vmem:[%s2271_s20 + $0xb0] sm:$0xff]  ;;  %v459_v38 = vld [vmem:[%s2271_s20 + $0xc8] sm:$0xff] }
  0x43   : > { %944 = vmatprep.subr.bf16.mxu1 %v2041_v39  ;;  %1057 = vmatprep.subr.bf16.mxu0 %v2043_v40  ;;  %v463_v39 = vld [vmem:[%s2271_s20 + $0xe8] sm:$0xff]  ;;  %v461_v40 = vld [vmem:[%s2271_s20 + $0xd8] sm:$0xff] }
  0x46   : > { %945 = vmatpush1.bf16.msra.mxu1 %v2045_v41  ;;  %1058 = vmatpush1.bf16.msra.mxu0 %v2046_v42  ;;  %v465_v41 = vld [vmem:[%s2271_s20 + $0xf8] sm:$0xff]  ;;  %v506_v42 = vpack.c.bf16 %v454_v35, %v450_v34  ;;  %v496_v34 = vld [vmem:[%s2271_s20 + $0x1f0] sm:$0xff] }
  0x47   : > { %946 = vmatprep.subr.bf16.mxu1 %v2047_v43  ;;  %1059 = vmatprep.subr.bf16.mxu0 %v2049_v44  ;;  %v508_v43 = vpack.c.bf16 %v456_v37, %v452_v36  ;;  %v511_v44 = vpack.c.bf16 %v463_v39, %v459_v38  ;;  %v1404_v37 = vld [vmem:[%s2789_s4] sm:$0xf]  ;;  %v429_v38 = vlaneseq }
  0x48   : > { %1407 = vperm.xlu0 %1985, %v1404_v37  }
  0x49   : > { %v430_v39 = vand.u32 127, %v429_v38 }
  0x4a   : > { %947 = vmatpush1.bf16.msra.mxu1 %v2051_v45  ;;  %1060 = vmatpush1.bf16.msra.mxu0 %v2052_v46  ;;  %v513_v45 = vpack.c.bf16 %v465_v41, %v461_v40  ;;  %v458_v46 = vld [vmem:[%s2271_s20 + $0xc0] sm:$0xff]  ;;  %v431_v40 = vstv %s1723_s19 }
  0x4b   : > { %948 = vmatprep.subr.bf16.mxu1 %v2053_v47  ;;  %1061 = vmatprep.subr.bf16.mxu0 %v2055_v48  ;;  %v462_v47 = vld [vmem:[%s2271_s20 + $0xe0] sm:$0xff]  ;;  %v460_v48 = vld [vmem:[%s2271_s20 + $0xd0] sm:$0xff]  ;;  %v2539_v41 = vadd.s32 %v431_v40, %v430_v39 }
  0x4c   : > { %v512_v55 = vpack.c.bf16 %v464_v49, %v460_v48 }
  0x4d   : > { %vm433_vm1 = vcmp.lt.s32.totalorder %v2539_v41, 300 }
  0x4e   : > { %949 = vmatpush1.bf16.msra.mxu1 %v2057_v53  ;;  %1062 = vmatpush1.bf16.msra.mxu0 %v2058_v54  ;;  %v473_v53 = vld [vmem:[%s2271_s20 + $0x138] sm:$0xff]  ;;  %v510_v54 = vpack.c.bf16 %v462_v47, %v458_v46  ;;  %vm2545_vm2 = vmpackc.low %vm433_vm1, %vm433_vm1  ;;  %v594_v47 = vld [vmem:[%s2787_s2] sm:$0x3] }
  0x4f   : > { %950 = vmatprep.subr.bf16.mxu1 %v2059_v57  ;;  %1063 = vmatprep.subr.bf16.mxu0 %v2061_v58  ;;  %v517_v57 = vpack.c.bf16 %v473_v53, %v469_v52  ;;  %v466_v58 = vld [vmem:[%s2271_s20 + $0x100] sm:$0xff]  ;;  %vm1153_vm3 = vmpackc.even %vm2545_vm2, %vm2545_vm2 }
  0x52   : > { %951 = vmatpush1.bf16.msra.mxu1 %v2063_v59  ;;  %1064 = vmatpush1.bf16.msra.mxu0 %v2064_v60  ;;  %v470_v59 = vld [vmem:[%s2271_s20 + $0x120] sm:$0xff]  ;;  %v468_v60 = vld [vmem:[%s2271_s20 + $0x110] sm:$0xff] }
  0x53   : > { %952 = vmatprep.subr.bf16.mxu1 %v2065_v61  ;;  %1065 = vmatprep.subr.bf16.mxu0 %v2067_v62  ;;  %v472_v61 = vld [vmem:[%s2271_s20 + $0x130] sm:$0xff]  ;;  %v475_v62 = vld [vmem:[%s2271_s20 + $0x148] sm:$0xff] }
  0x56   : > { %953 = vmatpush1.bf16.msra.mxu1 %v2069_v63  ;;  %1066 = vmatpush1.bf16.msra.mxu0 %v2070_v0  ;;  %v479_v63 = vld [vmem:[%s2271_s20 + $0x168] sm:$0xff]  ;;  %v477_v0 = vld [vmem:[%s2271_s20 + $0x158] sm:$0xff] }
  0x57   : > { %954 = vmatprep.subr.bf16.mxu1 %v2071_v1  ;;  %1067 = vmatprep.subr.bf16.mxu0 %v2073_v2  ;;  %v481_v1 = vld [vmem:[%s2271_s20 + $0x178] sm:$0xff]  ;;  %v514_v2 = vpack.c.bf16 %v470_v59, %v466_v58 }
  0x5a   : > { %955 = vmatpush1.bf16.msra.mxu1 %v2075_v3  ;;  %1068 = vmatpush1.bf16.msra.mxu0 %v2076_v5  ;;  %v516_v3 = vpack.c.bf16 %v472_v61, %v468_v60  ;;  %v519_v5 = vpack.c.bf16 %v479_v63, %v475_v62 }
  0x5b   : > { %956 = vmatprep.subr.bf16.mxu1 %v2077_v6  ;;  %1069 = vmatprep.subr.bf16.mxu0 %v2079_v7  ;;  %v521_v6 = vpack.c.bf16 %v481_v1, %v477_v0  ;;  %v474_v7 = vld [vmem:[%s2271_s20 + $0x140] sm:$0xff] }
  0x5e   : > { %957 = vmatpush1.bf16.msra.mxu1 %v2081_v8  ;;  %1070 = vmatpush1.bf16.msra.mxu0 %v2082_v9  ;;  %v478_v8 = vld [vmem:[%s2271_s20 + $0x160] sm:$0xff]  ;;  %v476_v9 = vld [vmem:[%s2271_s20 + $0x150] sm:$0xff] }
  0x5f   : > { %v518_v15 = vpack.c.bf16 %v478_v8, %v474_v7  ;;  %v520_v16 = vpack.c.bf16 %v480_v10, %v476_v9 }
  0x61   : > { %959 = vmatmul.mubr.bf16.vlgmr.msra.gmra.mrb[0].mxu1 %v498_v18  ;;  %1072 = vmatmul.mubr.bf16.vlgmr.msra.gmra.mrb[0].mxu0 %v500_v19  ;;  %v525_v18 = vpack.c.bf16 %v489_v14, %v485_v13  ;;  %v482_v19 = vld [vmem:[%s2271_s20 + $0x180] sm:$0xff] }
  0x62   : > { %968 = vmatprep.mubr.bf16.mxu1 %v503_v20  ;;  %1081 = vmatprep.mubr.bf16.mxu0 %v505_v21  ;;  %v486_v20 = vld [vmem:[%s2271_s20 + $0x1a0] sm:$0xff]  ;;  %v484_v21 = vld [vmem:[%s2271_s20 + $0x190] sm:$0xff] }
  0x63   : > { %v522_v27 = vpack.c.bf16 %v486_v20, %v482_v19  ;;  %v524_v28 = vpack.c.bf16 %v488_v22, %v484_v21 }
  0x69   : > { %969 = vmatmul.mubr.bf16.gmra.mrb[4].mxu1 %v502_v30  ;;  %1082 = vmatmul.mubr.bf16.gmra.mrb[4].mxu0 %v504_v31  ;;  %v529_v30 = vpack.c.bf16 %v497_v26, %v493_v25  ;;  %v490_v31 = vld [vmem:[%s2271_s20 + $0x1c0] sm:$0xff] }
  0x6a   : > { %978 = vmatprep.mubr.bf16.mxu1 %v507_v32  ;;  %1091 = vmatprep.mubr.bf16.mxu0 %v509_v33  ;;  %v494_v32 = vld [vmem:[%s2271_s20 + $0x1e0] sm:$0xff]  ;;  %v492_v33 = vld [vmem:[%s2271_s20 + $0x1d0] sm:$0xff] }
  0x6b   : > { %v526_v35 = vpack.c.bf16 %v494_v32, %v490_v31  ;;  %v528_v36 = vpack.c.bf16 %v496_v34, %v492_v33 }
  0x71   : > { %979 = vmatmul.mubr.bf16.gmra.mrb[8].mxu1 %v506_v42  ;;  %1092 = vmatmul.mubr.bf16.gmra.mrb[8].mxu0 %v508_v43  ;;  %v1154_v43 = vsel %vm1153_vm3, 16843009, %v2161_v4 }
  0x72   : > { %988 = vmatprep.mubr.bf16.mxu1 %v511_v44  ;;  %1101 = vmatprep.mubr.bf16.mxu0 %v513_v45  ;;  %v2162_v44 = vmov 0.0   ;;  %v597_v45 = vshrl.u32 %v429_v38, 7 }
  0x73   : > { %1155 = vxpose.xlu0.c.b8.start.end [1/1] (short) %v1154_v43, 128  ;;  %1836 = vmatprep.subr.bf16.mxu0 %v2162_v44 }
  0x74   : > { %1856 = vmatprep.subr.bf16.mxu1 %v2162_v44  ;;  %v598_v46 = vsub.s32 0, %v597_v45  ;;  %v602_v48 = vsub.s32 1, %v597_v45 }
  0x76   : > { %v2560_v49 = vrot.slane %v594_v47, %v598_v46  ;;  %v2562_v50 = vrot.slane %v594_v47, %v602_v48 }
  0x79   : > { %989 = vmatmul.mubr.bf16.gmra.mrb[12].mxu1 %v510_v54  ;;  %1102 = vmatmul.mubr.bf16.gmra.mrb[12].mxu0 %v512_v55 }
  0x7a   : > { %998 = vmatprep.mubr.bf16.mxu1 %v515_v56  ;;  %1111 = vmatprep.mubr.bf16.mxu0 %v517_v57 }
  0x81   : > { %999 = vmatmul.mubr.bf16.gmra.mrb[16].mxu1 %v514_v2  ;;  %1112 = vmatmul.mubr.bf16.gmra.mrb[16].mxu0 %v516_v3 }
  0x82   : > { %1008 = vmatprep.mubr.bf16.mxu1 %v519_v5  ;;  %1121 = vmatprep.mubr.bf16.mxu0 %v521_v6 }
  0x89   : > { %1009 = vmatmul.mubr.bf16.gmra.mrb[20].mxu1 %v518_v15  ;;  %1122 = vmatmul.mubr.bf16.gmra.mrb[20].mxu0 %v520_v16 }
  0x8a   : > { %1018 = vmatprep.mubr.bf16.mxu1 %v523_v17  ;;  %1131 = vmatprep.mubr.bf16.mxu0 %v525_v18 }
  0x91   : > { %1019 = vmatmul.mubr.bf16.gmra.mrb[24].mxu1 %v522_v27  ;;  %1132 = vmatmul.mubr.bf16.gmra.mrb[24].mxu0 %v524_v28 }
  0x92   : > { %1028 = vmatprep.mubr.bf16.mxu1 %v527_v29  ;;  %1141 = vmatprep.mubr.bf16.mxu0 %v529_v30 }
  0x99   : > { %1029 = vmatmul.mubr.bf16.gmra.mrb[28].mxu1 %v526_v35  ;;  %1142 = vmatmul.mubr.bf16.gmra.mrb[28].mxu0 %v528_v36 }
  0x9a   : > { %1852 = vmatprep.mubr.msk.bf16.mxu0 %vm2163_vm4, %v2162_v44  ;;  %1872 = vmatprep.mubr.msk.bf16.mxu1 %vm2163_vm4, %v2162_v44 }
  0xc7   : > { %v2572_v3 = vpop.permute.xlu0 %1407 }
  0xe5   : > { %v1159_v20 = vpop.trf.xlu0 }
  0xe6   : > { %vm1163_vm5 = vnez %v1159_v20 }
  0xe7   : > { %v2585_v23 = vsel %vm1163_vm5, 16843009, %v2161_v4 }
  0xe8   : > { %v1173_v25 = vunpack.c.2.s8 %v2585_v23 }
  0xe9   : > { %v1160_v48 = vpop.trf.xlu0 }
  0xea   : > { %v1191_v32 = vpack.c.b16 %v1173_v25, %v1173_v25  ;;  %vm1164_vm6 = vnez %v1160_v48 }
  0xec   : > { %v1192_v45 = vpack.c.b8 %v1191_v32, %v1191_v32 }
  0xee   : > { %vm1221_vm7 = vnez %v1192_v45 }
 0x134   : > { %v960_v51 = vpop.f32.mrb[0].mxu1  ;;  %v1073_v52 = vpop.f32.mrb[0].mxu0 }
 0x135   : > { %v961_v53 = vadd.f32 %v960_v51, %v2560_v49  ;;  %v962_v54 = vpop.f32.mrb[1].mxu1  ;;  %v1075_v55 = vpop.f32.mrb[1].mxu0 }
 0x136   : > { %v963_v56 = vadd.f32 %v962_v54, %v2562_v50  ;;  %v964_v57 = vpop.f32.mrb[2].mxu1  ;;  %v1077_v58 = vpop.f32.mrb[2].mxu0  ;;  %v1237_v54 = vsel %vm1221_vm7, 16843009, %v2161_v4  ;;  %vm1455_vm7 = vcmask 1043456  }
 0x137   : > { %v2566_v59 = vadd.f32 %v1073_v52, %v961_v53  ;;  %v965_v60 = vadd.f32 %v964_v57, %v2560_v49  ;;  %v966_v61 = vpop.f32.mrb[3].mxu1  ;;  %v1079_v62 = vpop.f32.mrb[3].mxu0  ;;  %v2600_v53 = vsel %vm1164_vm6, 16843009, %v2161_v4 }
 0x138   : > { %v1076_v63 = vadd.f32 %v1075_v55, %v963_v56  ;;  %v967_v0 = vadd.f32 %v966_v61, %v2562_v50 }
 0x139   : > { %v2570_v1 = vadd.f32 %v1077_v58, %v965_v60  ;;  %v1178_v58 = vunpack.c.3.s8 %v2600_v53  ;;  %v1253_v60 = vunpack.c.0.s8 %v1237_v54 }
 0x13a   : > { %v1080_v2 = vadd.f32 %v1079_v62, %v967_v0  ;;  %2083 = vtanh.f32 %v1076_v63 }
 0x13b   : > { %v1789_v5 = vpack.c.bf16 %v2570_v1, %v2566_v59  ;;  %vm1269_vm8 = vcmp.ne.s32.totalorder %v1253_v60, 0 }
 0x13c   : > { %2085 = vtanh.f32 %v1080_v2  ;;  %v970_v6 = vpop.f32.mrb[4].mxu1  ;;  %v1083_v7 = vpop.f32.mrb[4].mxu0 }
 0x13d   : > { %v971_v8 = vadd.f32 %v970_v6, %v2560_v49  ;;  %v972_v9 = vpop.f32.mrb[5].mxu1  ;;  %v1085_v10 = vpop.f32.mrb[5].mxu0 }
 0x13e   : > { %v973_v11 = vadd.f32 %v972_v9, %v2562_v50  ;;  %v974_v12 = vpop.f32.mrb[6].mxu1  ;;  %v1087_v13 = vpop.f32.mrb[6].mxu0  ;;  %v1201_v9 = vpack.c.b16 %v1178_v58, %v1178_v58 }
 0x13f   : > { %v2578_v14 = vadd.f32 %v1083_v7, %v971_v8  ;;  %v975_v15 = vadd.f32 %v974_v12, %v2560_v49  ;;  %v976_v16 = vpop.f32.mrb[7].mxu1  ;;  %v1089_v17 = vpop.f32.mrb[7].mxu0 }
 0x140   : > { %v1086_v18 = vadd.f32 %v1085_v10, %v973_v11  ;;  %v977_v19 = vadd.f32 %v976_v16, %v2562_v50  ;;  %v1285_v16 = vsel %vm1269_vm8, 1, %v2161_v4  ;;  %v1202_v20 = vpack.c.b8 %v1201_v9, %v1201_v9 }
 0x141   : > { %v2582_v21 = vadd.f32 %v1087_v13, %v975_v15  ;;  %1306 = vperm.xlu0 %1985, %v1285_v16  }
 0x142   : > { %v1090_v22 = vadd.f32 %v1089_v17, %v977_v19  ;;  %2087 = vtanh.f32 %v1086_v18  ;;  %v1161_v19 = vpop.trf.xlu0  ;;  %vm1226_vm10 = vnez %v1202_v20 }
 0x143   : > { %v1792_v24 = vpack.c.bf16 %v2582_v21, %v2578_v14  ;;  %vm1165_vm9 = vnez %v1161_v19  ;;  %v1242_v32 = vsel %vm1226_vm10, 16843009, %v2161_v4 }
 0x144   : > { %2089 = vtanh.f32 %v1090_v22  ;;  %v980_v26 = vpop.f32.mrb[8].mxu1  ;;  %v1093_v27 = vpop.f32.mrb[8].mxu0 }
 0x145   : > { %v2084_v28 = vpop.eup %2083  ;;  %v981_v29 = vadd.f32 %v980_v26, %v2560_v49  ;;  %v982_v30 = vpop.f32.mrb[9].mxu1  ;;  %v2617_v26 = vsel %vm1165_vm9, 16843009, %v2161_v4 }
 0x146   : > { %v1095_v31 = vpop.f32.mrb[9].mxu0  ;;  %v2086_v33 = vpop.eup %2085  ;;  %v983_v34 = vadd.f32 %v982_v30, %v2562_v50 }
 0x147   : > { %v984_v35 = vpop.f32.mrb[10].mxu1  ;;  %v1097_v36 = vpop.f32.mrb[10].mxu0  ;;  %v2592_v37 = vadd.f32 %v1093_v27, %v981_v29  ;;  %v1395_v43 = vpack.c.bf16 %v2086_v33, %v2084_v28  ;;  %v1180_v28 = vunpack.c.1.s8 %v2617_v26  ;;  %v1181_v29 = vunpack.c.2.s8 %v2617_v26 }
 0x148   : > { %v985_v38 = vadd.f32 %v984_v35, %v2560_v49  ;;  %v986_v39 = vpop.f32.mrb[11].mxu1  ;;  %v1099_v40 = vpop.f32.mrb[11].mxu0  ;;  %v1096_v46 = vadd.f32 %v1095_v31, %v983_v34 }
 0x149   : > { %v987_v47 = vadd.f32 %v986_v39, %v2562_v50  ;;  %1837 = vmatpush3.bf16.xpose.msra.mxu0 %v1395_v43  ;;  %v1205_v39 = vpack.c.b16 %v1180_v28, %v1180_v28 }
 0x14a   : > { %v2596_v51 = vadd.f32 %v1097_v36, %v985_v38  ;;  %1838 = vmatprep.subr.bf16.mxu0 %v2162_v44  ;;  %2091 = vtanh.f32 %v1096_v46  ;;  %v1258_v38 = vunpack.c.0.s8 %v1242_v32 }
 0x14b   : > { %v1100_v52 = vadd.f32 %v1099_v40, %v987_v47  ;;  %v1207_v40 = vpack.c.b16 %v1181_v29, %v1181_v29 }
 0x14c   : > { %v1795_v55 = vpack.c.bf16 %v2596_v51, %v2592_v37  ;;  %v990_v56 = vpop.f32.mrb[12].mxu1  ;;  %v1103_v57 = vpop.f32.mrb[12].mxu0  ;;  %vm1274_vm11 = vcmp.ne.s32.totalorder %v1258_v38, 0 }
 0x14d   : > { %2093 = vtanh.f32 %v1100_v52  ;;  %v2088_v61 = vpop.eup %2087  ;;  %v991_v62 = vadd.f32 %v990_v56, %v2560_v49  ;;  %v992_v63 = vpop.f32.mrb[13].mxu1 }
 0x14e   : > { %v1105_v0 = vpop.f32.mrb[13].mxu0  ;;  %v2090_v2 = vpop.eup %2089  ;;  %v993_v6 = vadd.f32 %v992_v63, %v2562_v50  ;;  %v1206_v63 = vpack.c.b8 %v1205_v39, %v1205_v39 }
 0x14f   : > { %v994_v7 = vpop.f32.mrb[14].mxu1  ;;  %v1107_v8 = vpop.f32.mrb[14].mxu0  ;;  %v2608_v10 = vadd.f32 %v1103_v57, %v991_v62  ;;  %v1396_v15 = vpack.c.bf16 %v2090_v2, %v2088_v61  ;;  %v1290_v62 = vsel %vm1274_vm11, 1, %v2161_v4  ;;  %v1208_v2 = vpack.c.b8 %v1207_v40, %v1207_v40 }
 0x150   : > { %v995_v11 = vadd.f32 %v994_v7, %v2560_v49  ;;  %v996_v12 = vpop.f32.mrb[15].mxu1  ;;  %v1109_v13 = vpop.f32.mrb[15].mxu0  ;;  %v1106_v17 = vadd.f32 %v1105_v0, %v993_v6  ;;  %1321 = vperm.xlu0 %1985, %v1290_v62   ;;  %vm1228_vm13 = vnez %v1206_v63 }
 0x151   : > { %v997_v18 = vadd.f32 %v996_v12, %v2562_v50  ;;  %1839 = vmatpush3.bf16.xpose.msra.mxu0 %v1396_v15  ;;  %v1162_v61 = vpop.trf.xlu0  ;;  %v1244_v15 = vsel %vm1228_vm13, 16843009, %v2161_v4  ;;  %vm1229_vm14 = vnez %v1208_v2 }
 0x152   : > { %v2613_v22 = vadd.f32 %v1107_v8, %v995_v11  ;;  %1840 = vmatprep.subr.bf16.mxu0 %v2162_v44  ;;  %2095 = vtanh.f32 %v1106_v17  ;;  %vm1166_vm12 = vnez %v1162_v61  ;;  %v1260_v20 = vunpack.c.0.s8 %v1244_v15 }
 0x153   : > { %v1110_v25 = vadd.f32 %v1109_v13, %v997_v18  ;;  %v2635_v7 = vsel %vm1166_vm12, 16843009, %v2161_v4 }
 0x154   : > { %v1798_v27 = vpack.c.bf16 %v2613_v22, %v2608_v10  ;;  %v1000_v30 = vpop.f32.mrb[16].mxu1  ;;  %v1113_v31 = vpop.f32.mrb[16].mxu0  ;;  %v1183_v9 = vunpack.c.0.s8 %v2635_v7  ;;  %v1185_v11 = vunpack.c.2.s8 %v2635_v7  ;;  %vm1276_vm15 = vcmp.ne.s32.totalorder %v1260_v20, 0 }
 0x155   : > { %2097 = vtanh.f32 %v1110_v25  ;;  %v2092_v33 = vpop.eup %2091  ;;  %v1001_v34 = vadd.f32 %v1000_v30, %v2560_v49  ;;  %v1002_v35 = vpop.f32.mrb[17].mxu1  ;;  %v1245_v25 = vsel %vm1229_vm14, 16843009, %v2161_v4 }
 0x156   : > { %v1115_v36 = vpop.f32.mrb[17].mxu0  ;;  %v1003_v45 = vadd.f32 %v1002_v35, %v2562_v50  ;;  %v1004_v46 = vpop.f32.mrb[18].mxu1  ;;  %v1211_v28 = vpack.c.b16 %v1183_v9, %v1183_v9 }
 0x157   : > { %v2094_v43 = vpop.eup %2093  ;;  %v1117_v47 = vpop.f32.mrb[18].mxu0  ;;  %v2626_v48 = vadd.f32 %v1113_v31, %v1001_v34  ;;  %v1005_v52 = vadd.f32 %v1004_v46, %v2560_v49  ;;  %v1215_v34 = vpack.c.b16 %v1185_v11, %v1185_v11  ;;  %v1292_v46 = vsel %vm1276_vm15, 1, %v2161_v4 }
 0x158   : > { %v1006_v54 = vpop.f32.mrb[19].mxu1  ;;  %v1119_v56 = vpop.f32.mrb[19].mxu0  ;;  %v1397_v57 = vpack.c.bf16 %v2094_v43, %v2092_v33  ;;  %v1116_v58 = vadd.f32 %v1115_v36, %v1003_v45  ;;  %v1261_v33 = vunpack.c.0.s8 %v1245_v25  ;;  %1327 = vperm.xlu0 %1985, %v1292_v46  }
 0x159   : > { %v1007_v60 = vadd.f32 %v1006_v54, %v2562_v50  ;;  %v2631_v0 = vadd.f32 %v1117_v47, %v1005_v52  ;;  %v1212_v52 = vpack.c.b8 %v1211_v28, %v1211_v28  ;;  %v1216_v54 = vpack.c.b8 %v1215_v34, %v1215_v34 }
 0x15a   : > { %1841 = vmatpush3.bf16.xpose.msra.mxu0 %v1397_v57  ;;  %2099 = vtanh.f32 %v1116_v58  ;;  %vm1277_vm0 = vcmp.ne.s32.totalorder %v1261_v33, 0 }
 0x15b   : > { %v1120_v6 = vadd.f32 %v1119_v56, %v1007_v60  ;;  %1842 = vmatprep.subr.bf16.mxu0 %v2162_v44  ;;  %v1801_v8 = vpack.c.bf16 %v2631_v0, %v2626_v48  ;;  %v1293_v57 = vsel %vm1277_vm0, 1, %v2161_v4  ;;  %vm1231_vm3 = vnez %v1212_v52 }
 0x15c   : > { %v1010_v12 = vpop.f32.mrb[20].mxu1  ;;  %v1123_v13 = vpop.f32.mrb[20].mxu0  ;;  %vm1233_vm4 = vnez %v1216_v54  ;;  %v1247_v62 = vsel %vm1231_vm3, 16843009, %v2161_v4  ;;  %1330 = vperm.xlu0 %1985, %v1293_v57  }
 0x15d   : > { %2101 = vtanh.f32 %v1120_v6  ;;  %v2096_v16 = vpop.eup %2095  ;;  %v1011_v17 = vadd.f32 %v1010_v12, %v2560_v49  ;;  %v1012_v18 = vpop.f32.mrb[21].mxu1  ;;  %v1249_v63 = vsel %vm1233_vm4, 16843009, %v2161_v4  ;;  %v1263_v12 = vunpack.c.0.s8 %v1247_v62 }
 0x15e   : > { %v1125_v19 = vpop.f32.mrb[21].mxu0  ;;  %v1013_v30 = vadd.f32 %v1012_v18, %v2562_v50  ;;  %v1014_v31 = vpop.f32.mrb[22].mxu1 }
 0x15f   : > { %v2098_v29 = vpop.eup %2097  ;;  %v1127_v32 = vpop.f32.mrb[22].mxu0  ;;  %v2645_v35 = vadd.f32 %v1123_v13, %v1011_v17  ;;  %v1015_v36 = vadd.f32 %v1014_v31, %v2560_v49  ;;  %v1265_v13 = vunpack.c.0.s8 %v1249_v63  ;;  %vm1279_vm5 = vcmp.ne.s32.totalorder %v1263_v12, 0 }
 0x160   : > { %v1016_v38 = vpop.f32.mrb[23].mxu1  ;;  %v1129_v39 = vpop.f32.mrb[23].mxu0  ;;  %v1398_v40 = vpack.c.bf16 %v2098_v29, %v2096_v16  ;;  %v1126_v43 = vadd.f32 %v1125_v19, %v1013_v30 }
 0x161   : > { %v1017_v45 = vadd.f32 %v1016_v38, %v2562_v50  ;;  %v2650_v47 = vadd.f32 %v1127_v32, %v1015_v36  ;;  %v1295_v32 = vsel %vm1279_vm5, 1, %v2161_v4  ;;  %vm1281_vm6 = vcmp.ne.s32.totalorder %v1265_v13, 0 }
 0x162   : > { %1843 = vmatpush3.bf16.xpose.msra.mxu0 %v1398_v40  ;;  %2103 = vtanh.f32 %v1126_v43  ;;  %1336 = vperm.xlu0 %1985, %v1295_v32   ;;  %v1297_v36 = vsel %vm1281_vm6, 1, %v2161_v4 }
 0x163   : > { %v1130_v56 = vadd.f32 %v1129_v39, %v1017_v45  ;;  %1844 = vmatprep.subr.bf16.mxu0 %v2162_v44  ;;  %v1804_v58 = vpack.c.bf16 %v2650_v47, %v2645_v35 }
 0x164   : > { %v1020_v60 = vpop.f32.mrb[24].mxu1  ;;  %v1133_v61 = vpop.f32.mrb[24].mxu0 }
 0x165   : > { %2105 = vtanh.f32 %v1130_v56  ;;  %v2100_v2 = vpop.eup %2099  ;;  %v1021_v6 = vadd.f32 %v1020_v60, %v2560_v49  ;;  %v1022_v9 = vpop.f32.mrb[25].mxu1 }
 0x166   : > { %v1135_v11 = vpop.f32.mrb[25].mxu0  ;;  %v1023_v16 = vadd.f32 %v1022_v9, %v2562_v50  ;;  %v1024_v17 = vpop.f32.mrb[26].mxu1  ;;  %1342 = vperm.xlu0 %1985, %v1297_v36   ;;  %v1174_v36 = vunpack.c.3.s8 %v2585_v23 }
 0x167   : > { %v2102_v15 = vpop.eup %2101  ;;  %v1137_v18 = vpop.f32.mrb[26].mxu0  ;;  %v2660_v19 = vadd.f32 %v1133_v61, %v1021_v6  ;;  %v1025_v20 = vadd.f32 %v1024_v17, %v2560_v49 }
 0x168   : > { %v1026_v25 = vpop.f32.mrb[27].mxu1  ;;  %v1139_v28 = vpop.f32.mrb[27].mxu0  ;;  %v1399_v29 = vpack.c.bf16 %v2102_v15, %v2100_v2  ;;  %v1136_v30 = vadd.f32 %v1135_v11, %v1023_v16 }
 0x169   : > { %v1027_v31 = vadd.f32 %v1026_v25, %v2562_v50  ;;  %v2665_v33 = vadd.f32 %v1137_v18, %v1025_v20  ;;  %v1403_v25 = vld [vmem:[%s2788_s3] sm:$0x3] }
 0x16a   : > { %1845 = vmatpush3.bf16.xpose.msra.mxu0 %v1399_v29  ;;  %2107 = vtanh.f32 %v1136_v30  ;;  %v1172_v29 = vunpack.c.1.s8 %v2585_v23 }
 0x16b   : > { %v1140_v34 = vadd.f32 %v1139_v28, %v1027_v31  ;;  %1846 = vmatprep.subr.bf16.mxu0 %v2162_v44  ;;  %v1807_v38 = vpack.c.bf16 %v2665_v33, %v2660_v19  ;;  %v1171_v28 = vunpack.c.0.s8 %v2585_v23 }
 0x16c   : > { %v1030_v39 = vpop.f32.mrb[28].mxu1  ;;  %v1143_v40 = vpop.f32.mrb[28].mxu0 }
 0x16d   : > { %2109 = vtanh.f32 %v1140_v34  ;;  %v2104_v43 = vpop.eup %2103  ;;  %v1031_v45 = vadd.f32 %v1030_v39, %v2560_v49  ;;  %v1032_v46 = vpop.f32.mrb[29].mxu1  ;;  %v1187_v30 = vpack.c.b16 %v1171_v28, %v1171_v28 }
 0x16e   : > { %v1145_v52 = vpop.f32.mrb[29].mxu0  ;;  %v1033_v56 = vadd.f32 %v1032_v46, %v2562_v50  ;;  %v1034_v57 = vpop.f32.mrb[30].mxu1 }
 0x16f   : > { %v2106_v54 = vpop.eup %2105  ;;  %v1147_v60 = vpop.f32.mrb[30].mxu0  ;;  %v2673_v61 = vadd.f32 %v1143_v40, %v1031_v45  ;;  %v1035_v62 = vadd.f32 %v1034_v57, %v2560_v49  ;;  %v1188_v40 = vpack.c.b8 %v1187_v30, %v1187_v30  ;;  %v1176_v57 = vunpack.c.1.s8 %v2600_v53 }
 0x170   : > { %v1036_v63 = vpop.f32.mrb[31].mxu1  ;;  %v1149_v2 = vpop.f32.mrb[31].mxu0  ;;  %v1400_v6 = vpack.c.bf16 %v2106_v54, %v2104_v43  ;;  %v1146_v9 = vadd.f32 %v1145_v52, %v1033_v56  ;;  %v1189_v43 = vpack.c.b16 %v1172_v29, %v1172_v29  ;;  %v1193_v56 = vpack.c.b16 %v1174_v36, %v1174_v36 }
 0x171   : > { %v1037_v11 = vadd.f32 %v1036_v63, %v2562_v50  ;;  %v2677_v12 = vadd.f32 %v1147_v60, %v1035_v62  ;;  %vm1219_vm8 = vnez %v1188_v40 }
 0x172   : > { %1847 = vmatpush3.bf16.xpose.msra.mxu0 %v1400_v6  ;;  %2111 = vtanh.f32 %v1146_v9  ;;  %v1190_v54 = vpack.c.b8 %v1189_v43, %v1189_v43  ;;  %v1235_v23 = vsel %vm1219_vm8, 16843009, %v2161_v4  ;;  %v1194_v60 = vpack.c.b8 %v1193_v56, %v1193_v56 }
 0x173   : > { %v1150_v13 = vadd.f32 %v1149_v2, %v1037_v11  ;;  %1848 = vmatprep.subr.bf16.mxu0 %v2162_v44  ;;  %v1810_v15 = vpack.c.bf16 %v2677_v12, %v2673_v61  ;;  %v1251_v63 = vunpack.c.0.s8 %v1235_v23  ;;  %v1177_v6 = vunpack.c.2.s8 %v2600_v53 }
 0x174   : > { %v2108_v16 = vpop.eup %2107  ;;  %vm1220_vm9 = vnez %v1190_v54  ;;  %vm1222_vm10 = vnez %v1194_v60  ;;  %v1197_v11 = vpack.c.b16 %v1176_v57, %v1176_v57  ;;  %v1182_v23 = vunpack.c.3.s8 %v2617_v26 }
 0x175   : > { %2113 = vtanh.f32 %v1150_v13  ;;  %v1236_v2 = vsel %vm1220_vm9, 16843009, %v2161_v4  ;;  %vm1267_vm11 = vcmp.ne.s32.totalorder %v1251_v63, 0  ;;  %v1184_v57 = vunpack.c.1.s8 %v2635_v7 }
 0x176   : > { %v1252_v13 = vunpack.c.0.s8 %v1236_v2  ;;  %v1209_v60 = vpack.c.b16 %v1182_v23, %v1182_v23  ;;  %v1186_v63 = vunpack.c.3.s8 %v2635_v7 }
 0x177   : > { %v2110_v17 = vpop.eup %2109 }
 0x178   : > { %v1401_v49 = vpack.c.bf16 %v2110_v17, %v2108_v16  ;;  %v1238_v16 = vsel %vm1222_vm10, 16843009, %v2161_v4  ;;  %v1179_v17 = vunpack.c.0.s8 %v2617_v26  ;;  %vm1268_vm13 = vcmp.ne.s32.totalorder %v1252_v13, 0 }
 0x179   : > { %v1284_v29 = vsel %vm1268_vm13, 1, %v2161_v4  ;;  %v1210_v2 = vpack.c.b8 %v1209_v60, %v1209_v60 }
 0x17a   : > { %1849 = vmatpush3.bf16.xpose.msra.mxu0 %v1401_v49  ;;  %v1198_v49 = vpack.c.b8 %v1197_v11, %v1197_v11  ;;  %v1203_v28 = vpack.c.b16 %v1179_v17, %v1179_v17 }
 0x17b   : > { %1850 = vmatprep.subr.bf16.mxu0 %v2162_v44  ;;  %vm1230_vm9 = vnez %v1210_v2 }
 0x17c   : > { %v2112_v18 = vpop.eup %2111  ;;  %vm1224_vm14 = vnez %v1198_v49  ;;  %v1246_v11 = vsel %vm1230_vm9, 16843009, %v2161_v4 }
 0x17d   : > { %v1262_v49 = vunpack.c.0.s8 %v1246_v11 }
 0x17f   : > { %v2114_v20 = vpop.eup %2113  ;;  %vm1278_vm13 = vcmp.ne.s32.totalorder %v1262_v49, 0 }
 0x180   : > { %v1402_v50 = vpack.c.bf16 %v2114_v20, %v2112_v18  ;;  %v1199_v18 = vpack.c.b16 %v1177_v6, %v1177_v6  ;;  %v1283_v20 = vsel %vm1267_vm11, 1, %v2161_v4  ;;  %vm1478_vm11 = vcmask 3072  }
 0x182   : > { %1851 = vmatpush3.bf16.xpose.msra.mxu0 %v1402_v50  ;;  %v1254_v50 = vunpack.c.0.s8 %v1238_v16  ;;  %v1454_v16 = vld [vmem:[%s2256_s24] sm:$0xf] }
 0x184   : > { %vm1270_vm15 = vcmp.ne.s32.totalorder %v1254_v50, 0 }
 0x189   : > { %1853 = vmatmul.mubr.bf16.vlgmr.msra.gmra.mrb[32].mxu0 %v1403_v25 }
 0x25c   : > { %v1444_v31 = vpop.f32.mrb[32].mxu0 }
 0x25d   : > { %v1445_v32 = vadd.f32 %v1444_v31, %v2572_v3  ;;  %v1854_v34 = vpop.f32.mrb[33].mxu0  ;;  %v1175_v3 = vunpack.c.0.s8 %v2600_v53  ;;  %v1200_v53 = vpack.c.b8 %v1199_v18, %v1199_v18  ;;  %v1240_v31 = vsel %vm1224_vm14, 16843009, %v2161_v4 }
 0x25e   : > { %v1447_v39 = vpop.f32.mrb[34].mxu0  ;;  %v1286_v34 = vsel %vm1270_vm15, 1, %v2161_v4  ;;  %v1256_v36 = vunpack.c.0.s8 %v1240_v31 }
 0x25f   : > { %v1855_v45 = vpop.f32.mrb[35].mxu0  ;;  %v2692_v46 = vsel %vm433_vm1, %v1445_v32, -1e+30  ;;  %v1195_v62 = vpack.c.b16 %v1175_v3, %v1175_v3  ;;  %vm1225_vm0 = vnez %v1200_v53  ;;  %v1204_v32 = vpack.c.b8 %v1203_v28, %v1203_v28 }
 0x260   : > { %v1456_v52 = vsel %vm1455_vm7, %v2692_v46, -inf  ;;  %1453 = vst [vmem:[%s2251_s21] sm:$0xf] %v2692_v46  ;;  %v1241_v39 = vsel %vm1225_vm0, 16843009, %v2161_v4  ;;  %vm1272_vm5 = vcmp.ne.s32.totalorder %v1256_v36, 0  ;;  %v1294_v28 = vsel %vm1278_vm13, 1, %v2161_v4 }
 0x261   : > { %1457 = vmax.xlane.f32.xlu1 %v1456_v52  ;;  %v1196_v9 = vpack.c.b8 %v1195_v62, %v1195_v62  ;;  %vm1227_vm4 = vnez %v1204_v32  ;;  %v1257_v43 = vunpack.c.0.s8 %v1241_v39  ;;  %v1288_v52 = vsel %vm1272_vm5, 1, %v2161_v4  ;;  %v1307_v32 = vpop.permute.xlu0 %1306 }
 0x262   : > { %v1243_v45 = vsel %vm1227_vm4, 16843009, %v2161_v4  ;;  %v1213_v62 = vpack.c.b16 %v1184_v57, %v1184_v57  ;;  %vm1349_vm5 = vcmp.eq.s32.totalorder %v1307_v32, 1 }
 0x263   : > { %vm1223_vm12 = vnez %v1196_v9  ;;  %vm1273_vm6 = vcmp.ne.s32.totalorder %v1257_v43, 0  ;;  %v1259_v3 = vunpack.c.0.s8 %v1243_v45  ;;  %v1217_v9 = vpack.c.b16 %v1186_v63, %v1186_v63 }
 0x264   : > { %v1239_v25 = vsel %vm1223_vm12, 16843009, %v2161_v4  ;;  %v1289_v54 = vsel %vm1273_vm6, 1, %v2161_v4  ;;  %v1214_v6 = vpack.c.b8 %v1213_v62, %v1213_v62 }
 0x265   : > { %v1255_v30 = vunpack.c.0.s8 %v1239_v25  ;;  %vm1275_vm8 = vcmp.ne.s32.totalorder %v1259_v3, 0  ;;  %v1218_v13 = vpack.c.b8 %v1217_v9, %v1217_v9 }
 0x266   : > { %v1291_v56 = vsel %vm1275_vm8, 1, %v2161_v4  ;;  %vm1232_vm10 = vnez %v1214_v6 }
 0x267   : > { %vm1271_vm3 = vcmp.ne.s32.totalorder %v1255_v30, 0  ;;  %v1248_v17 = vsel %vm1232_vm10, 16843009, %v2161_v4  ;;  %vm1234_vm12 = vnez %v1218_v13 }
 0x268   : > { %v1287_v40 = vsel %vm1271_vm3, 1, %v2161_v4  ;;  %v1250_v25 = vsel %vm1234_vm12, 16843009, %v2161_v4 }
 0x272   : > { %1300 = vperm.xlu1 %1986, %v1283_v20   ;;  %v1264_v20 = vunpack.c.0.s8 %v1248_v17 }
 0x274   : > { %vm1280_vm14 = vcmp.ne.s32.totalorder %v1264_v20, 0 }
 0x275   : > { %v1296_v31 = vsel %vm1280_vm14, 1, %v2161_v4 }
 0x276   : > { %1303 = vperm.xlu1 %1986, %v1284_v29   ;;  %v1266_v29 = vunpack.c.0.s8 %v1250_v25 }
 0x278   : > { %vm1282_vm4 = vcmp.ne.s32.totalorder %v1266_v29, 0 }
 0x279   : > { %v1298_v36 = vsel %vm1282_vm4, 1, %v2161_v4 }
 0x27a   : > { %1309 = vperm.xlu1 %1986, %v1286_v34  }
 0x27e   : > { %1312 = vperm.xlu1 %1986, %v1287_v40  }
 0x282   : > { %1315 = vperm.xlu1 %1986, %v1288_v52  }
 0x286   : > { %1318 = vperm.xlu1 %1986, %v1289_v54  }
 0x28a   : > { %1324 = vperm.xlu1 %1986, %v1291_v56  }
 0x2ee   : > { %v1458_v26 = vpop.xlane.xlu1 %1457 }
 0x2ef   : > { %v1459_v18 = vmax.f32 %v1454_v16, %v1458_v26 }
 0x2f1   : > { %v1460_v50 = vsub.f32 %v1454_v16, %v1459_v18  ;;  %1538 = vst.msk [vmem:[%s2256_s24] sm:$0xf] %vm1478_vm11, %v1459_v18  ;;  %1465 = vperm.xlu1 %1986, %v1459_v18  }
 0x2f2   : > { %v1301_v7 = vpop.permute.xlu1 %1300 }
 0x2f3   : > { %v1461_v53 = vmul.f32 1.442695, %v1460_v50  ;;  %vm1347_vm15 = vcmp.eq.s32.totalorder %v1301_v7, 1 }
 0x2f5   : > { %2115 = vpow2.f32 %v1461_v53  ;;  %1333 = vperm.xlu1 %1986, %v1294_v28  }
 0x2f6   : > { %v1304_v30 = vpop.permute.xlu1 %1303 }
 0x2f7   : > { %vm1348_vm0 = vcmp.eq.s32.totalorder %v1304_v30, 1 }
 0x2f8   : > { %vm1788_vm3 = vmpackc.low %vm1348_vm0, %vm1347_vm15 }
 0x2f9   : > { %1857 = vmatpush3.bf16.msk.msra.mxu1 %vm1788_vm3, %v1789_v5  ;;  %1339 = vperm.xlu1 %1986, %v1296_v31   ;;  %v1322_v5 = vpop.permute.xlu0 %1321 }
 0x2fa   : > { %v1310_v34 = vpop.permute.xlu1 %1309  ;;  %1858 = vmatprep.subr.bf16.mxu1 %v2162_v44  ;;  %vm1354_vm13 = vcmp.eq.s32.totalorder %v1322_v5, 1 }
 0x2fb   : > { %vm1350_vm6 = vcmp.eq.s32.totalorder %v1310_v34, 1 }
 0x2fc   : > { %vm1791_vm8 = vmpackc.low %vm1350_vm6, %vm1349_vm5 }
 0x2fd   : > { %1345 = vperm.xlu1 %1986, %v1298_v36   ;;  %1859 = vmatpush3.bf16.msk.msra.mxu1 %vm1791_vm8, %v1792_v24  ;;  %v1328_v14 = vpop.permute.xlu0 %1327 }
 0x2fe   : > { %v1313_v39 = vpop.permute.xlu1 %1312  ;;  %1860 = vmatprep.subr.bf16.mxu1 %v2162_v44  ;;  %vm1356_vm0 = vcmp.eq.s32.totalorder %v1328_v14, 1 }
 0x2ff   : > { %v2116_v59 = vpop.eup %2115  ;;  %vm1351_vm9 = vcmp.eq.s32.totalorder %v1313_v39, 1 }
 0x301   : > { %1483 = vperm.xlu1 %1986, %v2116_v59   ;;  %v1331_v24 = vpop.permute.xlu0 %1330 }
 0x302   : > { %v1316_v1 = vpop.permute.xlu1 %1315  ;;  %vm1357_vm5 = vcmp.eq.s32.totalorder %v1331_v24, 1 }
 0x303   : > { %vm1352_vm10 = vcmp.eq.s32.totalorder %v1316_v1, 1 }
 0x304   : > { %vm1794_vm12 = vmpackc.low %vm1352_vm10, %vm1351_vm9 }
 0x305   : > { %1861 = vmatpush3.bf16.msk.msra.mxu1 %vm1794_vm12, %v1795_v55  ;;  %v1337_v10 = vpop.permute.xlu0 %1336 }
 0x306   : > { %v1319_v4 = vpop.permute.xlu1 %1318  ;;  %1862 = vmatprep.subr.bf16.mxu1 %v2162_v44  ;;  %vm1359_vm9 = vcmp.eq.s32.totalorder %v1337_v10, 1 }
 0x307   : > { %vm1353_vm14 = vcmp.eq.s32.totalorder %v1319_v4, 1 }
 0x308   : > { %vm1797_vm15 = vmpackc.low %vm1354_vm13, %vm1353_vm14 }
 0x309   : > { %1863 = vmatpush3.bf16.msk.msra.mxu1 %vm1797_vm15, %v1798_v27  ;;  %v1343_v48 = vpop.permute.xlu0 %1342 }
 0x30a   : > { %v1325_v21 = vpop.permute.xlu1 %1324  ;;  %1864 = vmatprep.subr.bf16.mxu1 %v2162_v44  ;;  %vm1361_vm13 = vcmp.eq.s32.totalorder %v1343_v48, 1 }
 0x30b   : > { %vm1355_vm3 = vcmp.eq.s32.totalorder %v1325_v21, 1 }
 0x30c   : > { %vm1800_vm4 = vmpackc.low %vm1356_vm0, %vm1355_vm3 }
 0x30d   : > { %1865 = vmatpush3.bf16.msk.msra.mxu1 %vm1800_vm4, %v1801_v8 }
 0x30e   : > { %1866 = vmatprep.subr.bf16.mxu1 %v2162_v44 }
 0x370   : > { %v1466_v37 = vpop.permute.xlu1 %1465 }
 0x371   : > { %v1468_v51 = vsub.f32 %v2692_v46, %v1466_v37  ;;  %v1480_v46 = vld [vmem:[%s2266_s15] sm:$0xf] }
 0x373   : > { %v1469_v55 = vmul.f32 1.442695, %v1468_v51 }
 0x374   : > { %v1334_v22 = vpop.permute.xlu1 %1333 }
 0x375   : > { %2117 = vpow2.f32 %v1469_v55  ;;  %vm1358_vm6 = vcmp.eq.s32.totalorder %v1334_v22, 1 }
 0x376   : > { %vm1803_vm8 = vmpackc.low %vm1358_vm6, %vm1357_vm5 }
 0x377   : > { %1867 = vmatpush3.bf16.msk.msra.mxu1 %vm1803_vm8, %v1804_v58 }
 0x378   : > { %v1340_v27 = vpop.permute.xlu1 %1339  ;;  %1868 = vmatprep.subr.bf16.mxu1 %v2162_v44 }
 0x379   : > { %vm1360_vm10 = vcmp.eq.s32.totalorder %v1340_v27, 1 }
 0x37a   : > { %vm1806_vm12 = vmpackc.low %vm1360_vm10, %vm1359_vm9 }
 0x37b   : > { %1869 = vmatpush3.bf16.msk.msra.mxu1 %vm1806_vm12, %v1807_v38 }
 0x37c   : > { %v1346_v0 = vpop.permute.xlu1 %1345  ;;  %1870 = vmatprep.subr.bf16.mxu1 %v2162_v44  ;;  %v1472_v44 = vld [vmem:[%s2261_s12] sm:$0xf] }
 0x37d   : > { %vm1362_vm14 = vcmp.eq.s32.totalorder %v1346_v0, 1  ;;  %v1473_v19 = vmul.f32 %v2116_v59, %v1472_v44 }
 0x37e   : > { %vm1809_vm15 = vmpackc.low %vm1362_vm14, %vm1361_vm13 }
 0x37f   : > { %v2118_v8 = vpop.eup %2117  ;;  %1871 = vmatpush3.bf16.msk.msra.mxu1 %vm1809_vm15, %v1810_v15 }
 0x380   : > { %v1813_v35 = vpack.c.bf16 %v2118_v8, %v2118_v8  ;;  %v1471_v47 = vsel %vm433_vm1, %v2118_v8, 0.0  ;;  %v1484_v61 = vpop.permute.xlu1 %1483 }
 0x381   : > { %v1474_v58 = vsel %vm1455_vm7, %v1471_v47, 0.0  ;;  %v1486_v12 = vmul.f32 %v1484_v61, %v1480_v46 }
 0x382   : > { %1475 = vadd.xlane.f32.xlu0 %v1474_v58  ;;  %1873 = vmatmul.mubr.msk.bf16.vlgmr.msra.gmra.mrb[32].mxu1 %vm2545_vm2, %v1813_v35 }
 0x40f   : > { %v1476_v33 = vpop.xlane.xlu0 %1475 }
 0x410   : > { %v1477_v38 = vadd.f32 %v1476_v33, %v1473_v19 }
 0x412   : > { %1479 = vst.msk [vmem:[%s2261_s12] sm:$0xf] %vm1478_vm11, %v1477_v38 }
 0x455   : > { %v1530_v15 = vpop.f32.mrb[32].mxu1 }
 0x456   : > { %v1536_v40 = vadd.f32 %v1530_v15, %v1486_v12  ;;  %v1874_v41 = vpop.f32.mrb[33].mxu1 }
 0x457   : > { %v1533_v43 = vpop.f32.mrb[34].mxu1 }
 0x458   : > { %1537 = vst [vmem:[%s2266_s15] sm:$0xf] %v1536_v40  ;;  %v1875_v45 = vpop.f32.mrb[35].mxu1 }
 0x459 PF: > { %s19_s9 = sadd.s32 1, %s2157_s9   ;;  %s2797_s21 = sld [smem:[#allocation2_spill]] }
 0x45a   : > { %p16_p10 = scmp.ge.s32.totalorder %s19_s9, 6   ;;  %s2798_s27 = smov %s2149_s29 }
 0x45b   : > { %s2799_s28 = smov %s2153_s30  ;;  %s2800_s29 = smov %s2803_s10 }
 0x45c   :  { %18 = sbr.rel (!%p16_p10) target bundleno = 3 (0x3), region = 110 }
 0x45f   : > { %s2801_s30 = smov %s2797_s21 }

</bundles_post_ra>
